<compile_context>
chip_gen: v5e
topology: v5e:2x2
jax: 0.10.0
libtpu: 0.0.40
codegen_flags: <defaults>
</compile_context>

<pallas_src>
import functools
import math

import jax
import jax.numpy as jnp
from jax.experimental import pallas as pl
from jax.experimental.pallas import tpu as pltpu


# ----------------------------------------------------------------------------
# Row-tiling helpers (persistent, lane-dense packed layout)
# ----------------------------------------------------------------------------
TM_MAX = 2048                      # packed (128-lane) rows per grid step
VMEM_LIMIT = 32 * 1024 * 1024      # explicit scoped-VMEM budget, safe on v5e/v6e/v7x

R_NODE = 4    # 32 channels * 4 rows  = 128 lanes
R_EDGE = 16   #  8 channels * 16 rows = 128 lanes


def _cdiv(a, b):
    return (a + b - 1) // b


def _round_up(x, m):
    return _cdiv(x, m) * m


def _tile_rows(rows):
    """Packed-row tile that bounds padding waste to < one tile."""
    nsteps = max(1, _cdiv(rows, TM_MAX))
    tm = _round_up(_cdiv(rows, nsteps), 8)
    return tm, _round_up(rows, tm)


def _packed_layout(m, r):
    """(tile, padded packed rows, padded unpacked rows) for m rows packed r-wide."""
    rows = max(1, _cdiv(m, r))
    tm, rows_pad = _tile_rows(rows)
    return tm, rows_pad, rows_pad * r


def _pad_rows2d(x, mp):
    m = x.shape[0]
    return x if m == mp else jnp.pad(x, ((0, mp - m), (0, 0)))


def _pad_rows1d(x, mp):
    m = x.shape[0]
    return x if m == mp else jnp.pad(x, (0, mp - m))


def _kron_eye(w, r):
    """Block-diagonal replication: r copies of w on the diagonal (lane-dense packing)."""
    return jnp.kron(jnp.eye(r, dtype=jnp.float32), w.astype(jnp.float32))


def _silu(x):
    return x * (1.0 / (1.0 + jnp.exp(-x)))


def _dsilu(x):
    s = 1.0 / (1.0 + jnp.exp(-x))
    return s * (1.0 + x * (1.0 - s))


# ----------------------------------------------------------------------------
# Pallas kernel bodies (all blocks lane-dense: last dim 128/256/512)
# ----------------------------------------------------------------------------
def _linear_kernel(x_ref, w_ref, o_ref):
    o_ref[...] = jnp.dot(x_ref[...], w_ref[...], preferred_element_type=jnp.float32)


def _radial_fwd_kernel(x_ref, w1_ref, w2_ref, o_ref):
    pre = jnp.dot(x_ref[...], w1_ref[...], preferred_element_type=jnp.float32)
    o_ref[...] = jnp.dot(_silu(pre), w2_ref[...], preferred_element_type=jnp.float32)


def _radial_bwd_kernel(x_ref, g_ref, w1_ref, w2t_ref, w1t_ref, dx_ref):
    # fused backward: recompute pre in-kernel (no 'pre' residual traffic)
    pre = jnp.dot(x_ref[...], w1_ref[...], preferred_element_type=jnp.float32)
    dh = jnp.dot(g_ref[...], w2t_ref[...], preferred_element_type=jnp.float32)
    dpre = dh * _dsilu(pre)
    dx_ref[...] = jnp.dot(dpre, w1t_ref[...], preferred_element_type=jnp.float32)


def _conv_update_kernel(agg_ref, feat_ref, wa_ref, ws_ref, o_ref, pre_ref):
    pre = jnp.dot(agg_ref[...], wa_ref[...], preferred_element_type=jnp.float32)
    pre = pre + jnp.dot(feat_ref[...], ws_ref[...], preferred_element_type=jnp.float32)
    pre_ref[...] = pre
    o_ref[...] = feat_ref[...] + _silu(pre)


def _conv_bwd_kernel(g_ref, pre_ref, wat_ref, wst_ref, dagg_ref, dfeat_ref):
    dpre = g_ref[...] * _dsilu(pre_ref[...])
    dagg_ref[...] = jnp.dot(dpre, wat_ref[...], preferred_element_type=jnp.float32)
    dfeat_ref[...] = g_ref[...] + jnp.dot(dpre, wst_ref[...],
                                          preferred_element_type=jnp.float32)


# ----------------------------------------------------------------------------
# Generic row-streamed pallas_call wrapper
# ----------------------------------------------------------------------------
def _row_call(kernel, row_inputs, weights, out_cols, *, flops=0, transcendentals=0):
    row_inputs = [x.astype(jnp.float32) for x in row_inputs]
    weights = [w.astype(jnp.float32) for w in weights]
    rows = row_inputs[0].shape[0]
    tm, rows_pad = _tile_rows(rows)
    if rows_pad != rows:  # defensive; the persistent layout keeps this a no-op
        row_inputs = [jnp.pad(x, ((0, rows_pad - rows), (0, 0))) for x in row_inputs]

    multi = isinstance(out_cols, (tuple, list))
    cols = tuple(out_cols) if multi else (out_cols,)

    in_specs = ([pl.BlockSpec((tm, x.shape[1]), lambda i: (i, 0)) for x in row_inputs]
                + [pl.BlockSpec(w.shape, lambda i: (0, 0)) for w in weights])
    out_specs = [pl.BlockSpec((tm, c), lambda i: (i, 0)) for c in cols]
    out_shape = [jax.ShapeDtypeStruct((rows_pad, c), jnp.float32) for c in cols]

    bytes_accessed = 4 * (sum(int(x.size) for x in row_inputs)
                          + sum(int(w.size) for w in weights)
                          + rows_pad * sum(cols))

    out = pl.pallas_call(
        kernel,
        grid=(rows_pad // tm,),
        in_specs=in_specs,
        out_specs=out_specs if multi else out_specs[0],
        out_shape=out_shape if multi else out_shape[0],
        compiler_params=pltpu.CompilerParams(
            dimension_semantics=("parallel",),
            vmem_limit_bytes=VMEM_LIMIT),
        cost_estimate=pl.CostEstimate(flops=int(flops),
                                      transcendentals=int(transcendentals),
                                      bytes_accessed=int(bytes_accessed)),
    )(*row_inputs, *weights)

    if rows_pad != rows:
        out = [o[:rows] for o in out] if multi else out[:rows]
    return out


# ---------------------------- raw pallas_call wrappers ----------------------
def _linear_raw(x, w):
    m, k = x.shape
    n = w.shape[1]
    return _row_call(_linear_kernel, [x], [w], n, flops=2 * m * k * n)


def _radial_fwd_raw(x, w1, w2):
    m, k = x.shape
    h = w1.shape[1]
    n = w2.shape[1]
    return _row_call(_radial_fwd_kernel, [x], [w1, w2], n,
                     flops=2 * m * (k * h + h * n), transcendentals=m * h)


def _radial_bwd_raw(x, g, w1, w2):
    m, k = x.shape
    h = w1.shape[1]
    n = w2.shape[1]
    return _row_call(_radial_bwd_kernel, [x, g], [w1, w2.T, w1.T], k,
                     flops=2 * m * (k * h + n * h + h * k), transcendentals=m * h)


def _conv_fwd_raw(agg, feat, wa, ws):
    m, c = agg.shape
    return _row_call(_conv_update_kernel, [agg, feat], [wa, ws], (c, c),
                     flops=4 * m * c * c, transcendentals=m * c)


def _conv_bwd_raw(g, pre, wa, ws):
    m, c = g.shape
    return _row_call(_conv_bwd_kernel, [g, pre], [wa.T, ws.T], (c, c),
                     flops=4 * m * c * c, transcendentals=m * c)


# ---------------------------- custom-VJP wrappers ----------------------------
@jax.custom_vjp
def linear_rows(x, w):
    return _linear_raw(x, w)


def _lin_fwd(x, w):
    return _linear_raw(x, w), (x, w)


def _lin_bwd(res, g):
    x, w = res
    dx = _linear_raw(g, w.T)                    # single Pallas pass, lane-dense
    dw = jnp.einsum("mk,mn->kn", x, g)          # DCE'd in the force pass
    return dx, dw


linear_rows.defvjp(_lin_fwd, _lin_bwd)


@jax.custom_vjp
def radial_mlp(x, w1, w2):
    return _radial_fwd_raw(x, w1, w2)


def _radial_vjp_fwd(x, w1, w2):
    # no 'pre' residual saved — recomputed inside the fused backward kernel
    return _radial_fwd_raw(x, w1, w2), (x, w1, w2)


def _radial_vjp_bwd(res, g):
    x, w1, w2 = res
    dx = _radial_bwd_raw(x, g, w1, w2)          # ONE fused Pallas kernel
    # weight grads recomputed in plain jnp; DCE'd when only pos-grad is requested
    pre = x @ w1
    dpre = (g @ w2.T) * _dsilu(pre)
    dw1 = jnp.einsum("mk,mh->kh", x, dpre)
    dw2 = jnp.einsum("mh,mn->hn", _silu(pre), g)
    return dx, dw1, dw2


radial_mlp.defvjp(_radial_vjp_fwd, _radial_vjp_bwd)


@jax.custom_vjp
def conv_update(agg, feat, wa, ws):
    out, _ = _conv_fwd_raw(agg, feat, wa, ws)
    return out


def _conv_vjp_fwd(agg, feat, wa, ws):
    out, pre = _conv_fwd_raw(agg, feat, wa, ws)
    return out, (agg, feat, pre, wa, ws)


def _conv_vjp_bwd(res, g):
    agg, feat, pre, wa, ws = res
    dagg, dfeat = _conv_bwd_raw(g, pre, wa, ws)  # ONE fused Pallas kernel
    dpre = g * _dsilu(pre)                       # DCE'd with the einsums below
    dwa = jnp.einsum("mk,mn->kn", agg, dpre)
    dws = jnp.einsum("mk,mn->kn", feat, dpre)
    return dagg, dfeat, dwa, dws


conv_update.defvjp(_conv_vjp_fwd, _conv_vjp_bwd)


# ----------------------------------------------------------------------------
# Geometry pieces (SphericalHarmonicEdgeAttrs / RadialBasisEdgeEncoding)
# ----------------------------------------------------------------------------
def spherical_harmonics_l012(vec_hat):
    """Real spherical harmonics for l=0,1,2 ('1x0e+1x1o+1x2e'), component norm."""
    # TODO(synk): component ordering follows the standard real-SH convention,
    #             not e3nn's exact m-ordering (harmless while only l=0 is consumed).
    x, y, z = vec_hat[:, 0], vec_hat[:, 1], vec_hat[:, 2]
    s3, s5, s15 = jnp.sqrt(3.0), jnp.sqrt(5.0), jnp.sqrt(15.0)
    sh0 = jnp.ones_like(x)[:, None]
    sh1 = jnp.stack([s3 * x, s3 * y, s3 * z], axis=-1)
    sh2 = jnp.stack(
        [
            s15 * x * y,
            s15 * y * z,
            0.5 * s5 * (3.0 * z * z - 1.0),
            s15 * x * z,
            0.5 * s15 * (x * x - y * y),
        ],
        axis=-1,
    )
    return jnp.concatenate([sh0, sh1, sh2], axis=-1)  # [E, 9]


def bessel_cutoff(r, r_max=3.5, num_basis=8, p=6.0):
    """BesselBasis(8) * PolynomialCutoff(p=6) as in NequIP RadialBasisEdgeEncoding."""
    n = jnp.arange(1, num_basis + 1, dtype=jnp.float32)
    bess = jnp.sqrt(2.0 / r_max) * jnp.sin(n[None, :] * jnp.pi * r[:, None] / r_max) / r[:, None]
    u = r / r_max
    fcut = (
        1.0
        - (p + 1.0) * (p + 2.0) / 2.0 * u**p
        + p * (p + 2.0) * u ** (p + 1.0)
        - p * (p + 1.0) / 2.0 * u ** (p + 2.0)
    )
    fcut = fcut * (u < 1.0)
    return bess * fcut[:, None]  # [E, 8]


# ----------------------------------------------------------------------------
# ConvNetLayer (scalar-channel NequIP interaction), lane-dense packed
# ----------------------------------------------------------------------------
def conv_layer(feat, edge_src, edge_dst, sh0, x_rad, pw, n_pad, nrows, erows):
    """feat: [n_pad,32]; x_rad: packed [erows,128]; pw: packed weights."""
    # radial MLP 8->16->silu->32 in one lane-dense Pallas call (weights resident)
    radial = radial_mlp(x_rad, pw["w1"], pw["w2"])               # [erows, 512]
    radial = radial.reshape(erows * R_EDGE, 32)                  # [e_pad, 32] (free reshape)
    # TODO(synk): fuse gather + message + segment scatter into the same pallas_call
    src_feat = jnp.take(feat, edge_src, axis=0)                  # [e_pad, 32]
    msg = src_feat * radial * sh0[:, None]                       # scalar (l=0) SH channel
    agg = jax.ops.segment_sum(msg, edge_dst, num_segments=n_pad)  # [n_pad, 32]
    # self-interaction + residual + SiLU fused in one lane-dense Pallas call
    out_p = conv_update(agg.reshape(nrows, 128), feat.reshape(nrows, 128),
                        pw["wconv"], pw["wself"])                # [nrows, 128]
    return out_p.reshape(n_pad, 32)


def _pack_conv_params(p, inv_sqrt_neigh):
    """Block-diagonal (lane-dense) packed weights; 1/sqrt(avg_neigh) folded into wconv."""
    return {
        "w1": _kron_eye(p["wr1"], R_EDGE),                       # [128, 256]
        "w2": _kron_eye(p["wr2"], R_EDGE),                       # [256, 512]
        "wconv": _kron_eye(p["wconv"] * inv_sqrt_neigh, R_NODE), # [128, 128]
        "wself": _kron_eye(p["wself"], R_NODE),                  # [128, 128]
    }


# ----------------------------------------------------------------------------
# Full HorseNet forward
# ----------------------------------------------------------------------------
NUM_SPECIES = 87  # '87x0e' node_attrs


def horsenet_energy(pos, atom_types, edge_src, edge_dst, batch, params, num_batch):
    n_atoms = atom_types.shape[0]
    n_edges = edge_src.shape[0]
    inv_sqrt_neigh = 1.0 / math.sqrt(n_edges / n_atoms)

    _, nrows, n_pad = _packed_layout(n_atoms, R_NODE)
    _, erows, e_pad = _packed_layout(n_edges, R_EDGE)

    # SphericalHarmonicEdgeAttrs
    edge_vec = jnp.take(pos, edge_dst, axis=0) - jnp.take(pos, edge_src, axis=0)
    r = jnp.sqrt(jnp.sum(edge_vec * edge_vec, axis=-1) + 1e-12)
    edge_attrs = spherical_harmonics_l012(edge_vec / r[:, None])  # [E, 9]

    # RadialBasisEdgeEncoding
    edge_emb = bessel_cutoff(r)                                    # [E, 8]

    # OneHotAtomEncoding + linear_1 (87x0e -> 32x0e) == embedding row gather
    feat = jnp.take(params["w_lin1"], atom_types, axis=0)          # [N, 32]

    # pad rows once into the persistent tile layout (zero rows are exact no-ops)
    feat = _pad_rows2d(feat, n_pad).astype(jnp.float32)            # [n_pad, 32]
    edge_emb_p = _pad_rows2d(edge_emb, e_pad)                      # [e_pad, 8]
    sh0_p = _pad_rows1d(edge_attrs[:, 0], e_pad)
    esrc_p = _pad_rows1d(edge_src, e_pad)
    edst_p = _pad_rows1d(edge_dst, e_pad)

    # lane-dense packed radial input: [e_pad,8] -> [erows,128] (row-major reshape)
    x_rad = edge_emb_p.reshape(erows, R_EDGE * 8).astype(jnp.float32)

    pw1 = _pack_conv_params(params["conv1"], inv_sqrt_neigh)
    pw2 = _pack_conv_params(params["conv2"], inv_sqrt_neigh)

    # convnet_1 / convnet_2
    feat = conv_layer(feat, esrc_p, edst_p, sh0_p, x_rad, pw1, n_pad, nrows, erows)
    feat = conv_layer(feat, esrc_p, edst_p, sh0_p, x_rad, pw2, n_pad, nrows, erows)

    # linear_2 (32->16) and linear_3 (16->2) folded into one weight (no nonlinearity
    # between them); column-padded to 8 and block-diagonally replicated so the head
    # consumes the packed [nrows,128] feat directly.
    w23 = jnp.dot(params["w_lin2"], params["w_lin3"])              # [32, 2]
    w23 = jnp.pad(w23, ((0, 0), (0, 6)))                           # [32, 8]
    w23_packed = _kron_eye(w23, R_NODE)                            # [128, 32]
    node_p = linear_rows(feat.reshape(nrows, 128), w23_packed)     # [nrows, 32]
    node_out = node_p.reshape(n_pad, 8)[:n_atoms, :2]              # [N, 2]

    atomic_energy = node_out[:, 0]
    atomic_charges = node_out[:, 1]

    # total_energy = zeros(B).scatter_add_(0, batch, atomic_energy)
    total_energy = jax.ops.segment_sum(atomic_energy, batch, num_segments=num_batch)

    aux = {
        "node_features": node_out,
        "edge_attrs": edge_attrs,
        "atomic_energy": atomic_energy,
        "atomic_charges": atomic_charges,
        "total_energy": total_energy,
    }
    return jnp.sum(total_energy), aux


def horsenet_forward(pos, atom_types, edge_src, edge_dst, batch, params, num_batch):
    energy_fn = functools.partial(
        horsenet_energy,
        atom_types=atom_types,
        edge_src=edge_src,
        edge_dst=edge_dst,
        batch=batch,
        params=params,
        num_batch=num_batch,
    )
    # forces = -d(total_energy)/d(pos)   (torch.autograd.grad equivalent)
    (_, aux), grad_pos = jax.value_and_grad(energy_fn, has_aux=True)(pos)
    aux["forces"] = -grad_pos
    return aux


# ----------------------------------------------------------------------------
# Deterministic parameter initialization (shapes implied by __init__)
# ----------------------------------------------------------------------------
def init_params(key):
    def lin(k, fan_in, fan_out):
        return jax.random.normal(k, (fan_in, fan_out), jnp.float32) / jnp.sqrt(float(fan_in))

    ks = jax.random.split(key, 11)
    conv1 = {"wr1": lin(ks[0], 8, 16), "wr2": lin(ks[1], 16, 32),
             "wconv": lin(ks[2], 32, 32), "wself": lin(ks[3], 32, 32)}
    conv2 = {"wr1": lin(ks[4], 8, 16), "wr2": lin(ks[5], 16, 32),
             "wconv": lin(ks[6], 32, 32), "wself": lin(ks[7], 32, 32)}
    return {
        "w_lin1": lin(ks[8], NUM_SPECIES, 32),
        "conv1": conv1,
        "conv2": conv2,
        "w_lin2": lin(ks[9], 32, 16),
        "w_lin3": lin(ks[10], 16, 2),
    }


# ----------------------------------------------------------------------------
# Main
# ----------------------------------------------------------------------------
if __name__ == "__main__":
    key = jax.random.PRNGKey(0)
    k_pos, k_type, k_par = jax.random.split(key, 3)

    # two molecules of 4 atoms each
    n_atoms_per_mol, n_mol = 4, 2
    n_atoms = n_atoms_per_mol * n_mol
    pos = jax.random.normal(k_pos, (n_atoms, 3), jnp.float32)
    atom_types = jax.random.randint(k_type, (n_atoms,), 0, NUM_SPECIES, jnp.int32)
    batch = jnp.repeat(jnp.arange(n_mol, dtype=jnp.int32), n_atoms_per_mol)

    # fully-connected (no self loops) edges within each molecule
    src_list, dst_list = [], []
    for m in range(n_mol):
        base = m * n_atoms_per_mol
        for i in range(n_atoms_per_mol):
            for j in range(n_atoms_per_mol):
                if i != j:
                    src_list.append(base + i)
                    dst_list.append(base + j)
    edge_src = jnp.array(src_list, jnp.int32)
    edge_dst = jnp.array(dst_list, jnp.int32)

    params = init_params(k_par)
    num_batch = n_mol  # batch[-1] + 1

    fwd = jax.jit(functools.partial(horsenet_forward, num_batch=num_batch))
    out = fwd(pos, atom_types, edge_src, edge_dst, batch, params)
    jax.block_until_ready(out)

    assert out["total_energy"].shape == (n_mol,)
    assert out["forces"].shape == (n_atoms, 3)
    assert out["atomic_energy"].shape == (n_atoms,)
    assert out["atomic_charges"].shape == (n_atoms,)
    assert bool(jnp.all(jnp.isfinite(out["forces"])))
    print("KERNEL_OK")
</pallas_src>

<mosaic_0001>
module attributes {stable_mosaic.version = 11 : i64} {
  func.func @_radial_fwd_kernel(%arg0: i32, %arg1: memref<8x128xf32, #tpu.memory_space<vmem>>, %arg2: memref<128x256xf32, #tpu.memory_space<vmem>>, %arg3: memref<256x512xf32, #tpu.memory_space<vmem>>, %arg4: memref<8x512xf32, #tpu.memory_space<vmem>>) attributes {dimension_semantics = [#tpu.dimension_semantics<parallel>], iteration_bounds = array<i64: 1>, scalar_prefetch = 0 : i64, scratch_operands = 0 : i64, tpu.core_type = #tpu.core_type<tc>, window_params = [{transform_indices = @transform_0, window_bounds = array<i64: 8, 128>}, {pipeline_mode = #tpu.pipeline_mode<synchronous>, transform_indices = @transform_1, window_bounds = array<i64: 128, 256>}, {pipeline_mode = #tpu.pipeline_mode<synchronous>, transform_indices = @transform_2, window_bounds = array<i64: 256, 512>}, {transform_indices = @transform_3, window_bounds = array<i64: 8, 512>}]} {
    %c0 = arith.constant 0 : index
    %c0_0 = arith.constant 0 : index
    %0 = vector.load %arg1[%c0, %c0_0] : memref<8x128xf32, #tpu.memory_space<vmem>>, vector<8x128xf32>
    %c0_1 = arith.constant 0 : index
    %c0_2 = arith.constant 0 : index
    %1 = vector.load %arg2[%c0_1, %c0_2] : memref<128x256xf32, #tpu.memory_space<vmem>>, vector<128x256xf32>
    %cst = arith.constant dense<0.000000e+00> : vector<8x256xf32>
    %2 = tpu.matmul %0, %1, %cst {dimension_numbers = #tpu.dot_dimension_numbers<[1], [0], [0], [1], [0, 0, 1, 1], [], []>} : vector<8x128xf32>, vector<128x256xf32>, vector<8x256xf32> -> vector<8x256xf32>
    %cst_3 = arith.constant 0.000000e+00 : f32
    %3 = vector.broadcast %cst_3 : f32 to vector<8x256xf32>
    %4 = arith.subf %3, %2 : vector<8x256xf32>
    %5 = math.exp %4 : vector<8x256xf32>
    %cst_4 = arith.constant 1.000000e+00 : f32
    %6 = vector.broadcast %cst_4 : f32 to vector<8x256xf32>
    %7 = arith.addf %6, %5 : vector<8x256xf32>
    %cst_5 = arith.constant 1.000000e+00 : f32
    %8 = vector.broadcast %cst_5 : f32 to vector<8x256xf32>
    %9 = arith.divf %8, %7 : vector<8x256xf32>
    %10 = arith.mulf %2, %9 : vector<8x256xf32>
    %c0_6 = arith.constant 0 : index
    %c0_7 = arith.constant 0 : index
    %11 = vector.load %arg3[%c0_6, %c0_7] : memref<256x512xf32, #tpu.memory_space<vmem>>, vector<256x512xf32>
    %cst_8 = arith.constant dense<0.000000e+00> : vector<8x512xf32>
    %12 = tpu.matmul %10, %11, %cst_8 {dimension_numbers = #tpu.dot_dimension_numbers<[1], [0], [0], [1], [0, 0, 1, 1], [], []>} : vector<8x256xf32>, vector<256x512xf32>, vector<8x512xf32> -> vector<8x512xf32>
    %c0_9 = arith.constant 0 : index
    %c0_10 = arith.constant 0 : index
    %13 = vector.load %arg4[%c0_9, %c0_10] : memref<8x512xf32, #tpu.memory_space<vmem>>, vector<8x512xf32>
    tpu.vector_store %arg4[%c0_9, %c0_10], %12 {strides = array<i32>} : memref<8x512xf32, #tpu.memory_space<vmem>>, vector<8x512xf32>,
    return
  }
  func.func @transform_0(%arg0: i32) -> (i32, i32) {
    %c0_i32 = arith.constant 0 : i32
    %c0_i32_0 = arith.constant 0 : i32
    return %arg0, %c0_i32 : i32, i32
  }
  func.func @transform_1(%arg0: i32) -> (i32, i32) {
    %c0_i32 = arith.constant 0 : i32
    %c0_i32_0 = arith.constant 0 : i32
    %c0_i32_1 = arith.constant 0 : i32
    return %c0_i32, %c0_i32_0 : i32, i32
  }
  func.func @transform_2(%arg0: i32) -> (i32, i32) {
    %c0_i32 = arith.constant 0 : i32
    %c0_i32_0 = arith.constant 0 : i32
    %c0_i32_1 = arith.constant 0 : i32
    return %c0_i32, %c0_i32_0 : i32, i32
  }
  func.func @transform_3(%arg0: i32) -> (i32, i32) {
    %c0_i32 = arith.constant 0 : i32
    %c0_i32_0 = arith.constant 0 : i32
    return %arg0, %c0_i32 : i32, i32
  }
}

module attributes {stable_mosaic.version = 11 : i64} {
  func.func @_conv_bwd_kernel(%arg0: i32, %arg1: memref<8x128xf32, #tpu.memory_space<vmem>>, %arg2: memref<8x128xf32, #tpu.memory_space<vmem>>, %arg3: memref<128x128xf32, #tpu.memory_space<vmem>>, %arg4: memref<128x128xf32, #tpu.memory_space<vmem>>, %arg5: memref<8x128xf32, #tpu.memory_space<vmem>>, %arg6: memref<8x128xf32, #tpu.memory_space<vmem>>) attributes {dimension_semantics = [#tpu.dimension_semantics<parallel>], iteration_bounds = array<i64: 1>, scalar_prefetch = 0 : i64, scratch_operands = 0 : i64, tpu.core_type = #tpu.core_type<tc>, window_params = [{transform_indices = @transform_0, window_bounds = array<i64: 8, 128>}, {transform_indices = @transform_1, window_bounds = array<i64: 8, 128>}, {pipeline_mode = #tpu.pipeline_mode<synchronous>, transform_indices = @transform_2, window_bounds = array<i64: 128, 128>}, {pipeline_mode = #tpu.pipeline_mode<synchronous>, transform_indices = @transform_3, window_bounds = array<i64: 128, 128>}, {transform_indices = @transform_4, window_bounds = array<i64: 8, 128>}, {transform_indices = @transform_5, window_bounds = array<i64: 8, 128>}]} {
    %c0 = arith.constant 0 : index
    %c0_0 = arith.constant 0 : index
    %0 = vector.load %arg1[%c0, %c0_0] : memref<8x128xf32, #tpu.memory_space<vmem>>, vector<8x128xf32>
    %c0_1 = arith.constant 0 : index
    %c0_2 = arith.constant 0 : index
    %1 = vector.load %arg2[%c0_1, %c0_2] : memref<8x128xf32, #tpu.memory_space<vmem>>, vector<8x128xf32>
    %cst = arith.constant 0.000000e+00 : f32
    %2 = vector.broadcast %cst : f32 to vector<8x128xf32>
    %3 = arith.subf %2, %1 : vector<8x128xf32>
    %4 = math.exp %3 : vector<8x128xf32>
    %cst_3 = arith.constant 1.000000e+00 : f32
    %5 = vector.broadcast %cst_3 : f32 to vector<8x128xf32>
    %6 = arith.addf %5, %4 : vector<8x128xf32>
    %cst_4 = arith.constant 1.000000e+00 : f32
    %7 = vector.broadcast %cst_4 : f32 to vector<8x128xf32>
    %8 = arith.divf %7, %6 : vector<8x128xf32>
    %cst_5 = arith.constant 1.000000e+00 : f32
    %9 = vector.broadcast %cst_5 : f32 to vector<8x128xf32>
    %10 = arith.subf %9, %8 : vector<8x128xf32>
    %11 = arith.mulf %1, %10 : vector<8x128xf32>
    %cst_6 = arith.constant 1.000000e+00 : f32
    %12 = vector.broadcast %cst_6 : f32 to vector<8x128xf32>
    %13 = arith.addf %12, %11 : vector<8x128xf32>
    %14 = arith.mulf %8, %13 : vector<8x128xf32>
    %15 = arith.mulf %0, %14 : vector<8x128xf32>
    %c0_7 = arith.constant 0 : index
    %c0_8 = arith.constant 0 : index
    %16 = vector.load %arg3[%c0_7, %c0_8] : memref<128x128xf32, #tpu.memory_space<vmem>>, vector<128x128xf32>
    %cst_9 = arith.constant dense<0.000000e+00> : vector<8x128xf32>
    %17 = tpu.matmul %15, %16, %cst_9 {dimension_numbers = #tpu.dot_dimension_numbers<[1], [0], [0], [1], [0, 0, 1, 1], [], []>} : vector<8x128xf32>, vector<128x128xf32>, vector<8x128xf32> -> vector<8x128xf32>
    %c0_10 = arith.constant 0 : index
    %c0_11 = arith.constant 0 : index
    %18 = vector.load %arg5[%c0_10, %c0_11] : memref<8x128xf32, #tpu.memory_space<vmem>>, vector<8x128xf32>
    tpu.vector_store %arg5[%c0_10, %c0_11], %17 {strides = array<i32>} : memref<8x128xf32, #tpu.memory_space<vmem>>, vector<8x128xf32>,
    %c0_12 = arith.constant 0 : index
    %c0_13 = arith.constant 0 : index
    %19 = vector.load %arg1[%c0_12, %c0_13] : memref<8x128xf32, #tpu.memory_space<vmem>>, vector<8x128xf32>
    %c0_14 = arith.constant 0 : index
    %c0_15 = arith.constant 0 : index
    %20 = vector.load %arg4[%c0_14, %c0_15] : memref<128x128xf32, #tpu.memory_space<vmem>>, vector<128x128xf32>
    %cst_16 = arith.constant dense<0.000000e+00> : vector<8x128xf32>
    %21 = tpu.matmul %15, %20, %cst_16 {dimension_numbers = #tpu.dot_dimension_numbers<[1], [0], [0], [1], [0, 0, 1, 1], [], []>} : vector<8x128xf32>, vector<128x128xf32>, vector<8x128xf32> -> vector<8x128xf32>
    %22 = arith.addf %19, %21 : vector<8x128xf32>
    %c0_17 = arith.constant 0 : index
    %c0_18 = arith.constant 0 : index
    %23 = vector.load %arg6[%c0_17, %c0_18] : memref<8x128xf32, #tpu.memory_space<vmem>>, vector<8x128xf32>
    tpu.vector_store %arg6[%c0_17, %c0_18], %22 {strides = array<i32>} : memref<8x128xf32, #tpu.memory_space<vmem>>, vector<8x128xf32>,
    return
  }
  func.func @transform_0(%arg0: i32) -> (i32, i32) {
    %c0_i32 = arith.constant 0 : i32
    %c0_i32_0 = arith.constant 0 : i32
    return %arg0, %c0_i32 : i32, i32
  }
  func.func @transform_1(%arg0: i32) -> (i32, i32) {
    %c0_i32 = arith.constant 0 : i32
    %c0_i32_0 = arith.constant 0 : i32
    return %arg0, %c0_i32 : i32, i32
  }
  func.func @transform_2(%arg0: i32) -> (i32, i32) {
    %c0_i32 = arith.constant 0 : i32
    %c0_i32_0 = arith.constant 0 : i32
    %c0_i32_1 = arith.constant 0 : i32
    return %c0_i32, %c0_i32_0 : i32, i32
  }
  func.func @transform_3(%arg0: i32) -> (i32, i32) {
    %c0_i32 = arith.constant 0 : i32
    %c0_i32_0 = arith.constant 0 : i32
    %c0_i32_1 = arith.constant 0 : i32
    return %c0_i32, %c0_i32_0 : i32, i32
  }
  func.func @transform_4(%arg0: i32) -> (i32, i32) {
    %c0_i32 = arith.constant 0 : i32
    %c0_i32_0 = arith.constant 0 : i32
    return %arg0, %c0_i32 : i32, i32
  }
  func.func @transform_5(%arg0: i32) -> (i32, i32) {
    %c0_i32 = arith.constant 0 : i32
    %c0_i32_0 = arith.constant 0 : i32
    return %arg0, %c0_i32 : i32, i32
  }
}

module attributes {stable_mosaic.version = 11 : i64} {
  func.func @_conv_update_kernel(%arg0: i32, %arg1: memref<8x128xf32, #tpu.memory_space<vmem>>, %arg2: memref<8x128xf32, #tpu.memory_space<vmem>>, %arg3: memref<128x128xf32, #tpu.memory_space<vmem>>, %arg4: memref<128x128xf32, #tpu.memory_space<vmem>>, %arg5: memref<8x128xf32, #tpu.memory_space<vmem>>, %arg6: memref<8x128xf32, #tpu.memory_space<vmem>>) attributes {dimension_semantics = [#tpu.dimension_semantics<parallel>], iteration_bounds = array<i64: 1>, scalar_prefetch = 0 : i64, scratch_operands = 0 : i64, tpu.core_type = #tpu.core_type<tc>, window_params = [{transform_indices = @transform_0, window_bounds = array<i64: 8, 128>}, {transform_indices = @transform_1, window_bounds = array<i64: 8, 128>}, {pipeline_mode = #tpu.pipeline_mode<synchronous>, transform_indices = @transform_2, window_bounds = array<i64: 128, 128>}, {pipeline_mode = #tpu.pipeline_mode<synchronous>, transform_indices = @transform_3, window_bounds = array<i64: 128, 128>}, {transform_indices = @transform_4, window_bounds = array<i64: 8, 128>}, {transform_indices = @transform_5, window_bounds = array<i64: 8, 128>}]} {
    %c0 = arith.constant 0 : index
    %c0_0 = arith.constant 0 : index
    %0 = vector.load %arg1[%c0, %c0_0] : memref<8x128xf32, #tpu.memory_space<vmem>>, vector<8x128xf32>
    %c0_1 = arith.constant 0 : index
    %c0_2 = arith.constant 0 : index
    %1 = vector.load %arg3[%c0_1, %c0_2] : memref<128x128xf32, #tpu.memory_space<vmem>>, vector<128x128xf32>
    %cst = arith.constant dense<0.000000e+00> : vector<8x128xf32>
    %2 = tpu.matmul %0, %1, %cst {dimension_numbers = #tpu.dot_dimension_numbers<[1], [0], [0], [1], [0, 0, 1, 1], [], []>} : vector<8x128xf32>, vector<128x128xf32>, vector<8x128xf32> -> vector<8x128xf32>
    %c0_3 = arith.constant 0 : index
    %c0_4 = arith.constant 0 : index
    %3 = vector.load %arg2[%c0_3, %c0_4] : memref<8x128xf32, #tpu.memory_space<vmem>>, vector<8x128xf32>
    %c0_5 = arith.constant 0 : index
    %c0_6 = arith.constant 0 : index
    %4 = vector.load %arg4[%c0_5, %c0_6] : memref<128x128xf32, #tpu.memory_space<vmem>>, vector<128x128xf32>
    %cst_7 = arith.constant dense<0.000000e+00> : vector<8x128xf32>
    %5 = tpu.matmul %3, %4, %cst_7 {dimension_numbers = #tpu.dot_dimension_numbers<[1], [0], [0], [1], [0, 0, 1, 1], [], []>} : vector<8x128xf32>, vector<128x128xf32>, vector<8x128xf32> -> vector<8x128xf32>
    %6 = arith.addf %2, %5 : vector<8x128xf32>
    %c0_8 = arith.constant 0 : index
    %c0_9 = arith.constant 0 : index
    %7 = vector.load %arg6[%c0_8, %c0_9] : memref<8x128xf32, #tpu.memory_space<vmem>>, vector<8x128xf32>
    tpu.vector_store %arg6[%c0_8, %c0_9], %6 {strides = array<i32>} : memref<8x128xf32, #tpu.memory_space<vmem>>, vector<8x128xf32>,
    %c0_10 = arith.constant 0 : index
    %c0_11 = arith.constant 0 : index
    %8 = vector.load %arg2[%c0_10, %c0_11] : memref<8x128xf32, #tpu.memory_space<vmem>>, vector<8x128xf32>
    %cst_12 = arith.constant 0.000000e+00 : f32
    %9 = vector.broadcast %cst_12 : f32 to vector<8x128xf32>
    %10 = arith.subf %9, %6 : vector<8x128xf32>
    %11 = math.exp %10 : vector<8x128xf32>
    %cst_13 = arith.constant 1.000000e+00 : f32
    %12 = vector.broadcast %cst_13 : f32 to vector<8x128xf32>
    %13 = arith.addf %12, %11 : vector<8x128xf32>
    %cst_14 = arith.constant 1.000000e+00 : f32
    %14 = vector.broadcast %cst_14 : f32 to vector<8x128xf32>
    %15 = arith.divf %14, %13 : vector<8x128xf32>
    %16 = arith.mulf %6, %15 : vector<8x128xf32>
    %17 = arith.addf %8, %16 : vector<8x128xf32>
    %c0_15 = arith.constant 0 : index
    %c0_16 = arith.constant 0 : index
    %18 = vector.load %arg5[%c0_15, %c0_16] : memref<8x128xf32, #tpu.memory_space<vmem>>, vector<8x128xf32>
    tpu.vector_store %arg5[%c0_15, %c0_16], %17 {strides = array<i32>} : memref<8x128xf32, #tpu.memory_space<vmem>>, vector<8x128xf32>,
    return
  }
  func.func @transform_0(%arg0: i32) -> (i32, i32) {
    %c0_i32 = arith.constant 0 : i32
    %c0_i32_0 = arith.constant 0 : i32
    return %arg0, %c0_i32 : i32, i32
  }
  func.func @transform_1(%arg0: i32) -> (i32, i32) {
    %c0_i32 = arith.constant 0 : i32
    %c0_i32_0 = arith.constant 0 : i32
    return %arg0, %c0_i32 : i32, i32
  }
  func.func @transform_2(%arg0: i32) -> (i32, i32) {
    %c0_i32 = arith.constant 0 : i32
    %c0_i32_0 = arith.constant 0 : i32
    %c0_i32_1 = arith.constant 0 : i32
    return %c0_i32, %c0_i32_0 : i32, i32
  }
  func.func @transform_3(%arg0: i32) -> (i32, i32) {
    %c0_i32 = arith.constant 0 : i32
    %c0_i32_0 = arith.constant 0 : i32
    %c0_i32_1 = arith.constant 0 : i32
    return %c0_i32, %c0_i32_0 : i32, i32
  }
  func.func @transform_4(%arg0: i32) -> (i32, i32) {
    %c0_i32 = arith.constant 0 : i32
    %c0_i32_0 = arith.constant 0 : i32
    return %arg0, %c0_i32 : i32, i32
  }
  func.func @transform_5(%arg0: i32) -> (i32, i32) {
    %c0_i32 = arith.constant 0 : i32
    %c0_i32_0 = arith.constant 0 : i32
    return %arg0, %c0_i32 : i32, i32
  }
}

module attributes {stable_mosaic.version = 11 : i64} {
  func.func @_linear_kernel(%arg0: i32, %arg1: memref<8x32xf32, #tpu.memory_space<vmem>>, %arg2: memref<32x128xf32, #tpu.memory_space<vmem>>, %arg3: memref<8x128xf32, #tpu.memory_space<vmem>>) attributes {dimension_semantics = [#tpu.dimension_semantics<parallel>], iteration_bounds = array<i64: 1>, scalar_prefetch = 0 : i64, scratch_operands = 0 : i64, tpu.core_type = #tpu.core_type<tc>, window_params = [{transform_indices = @transform_0, window_bounds = array<i64: 8, 32>}, {pipeline_mode = #tpu.pipeline_mode<synchronous>, transform_indices = @transform_1, window_bounds = array<i64: 32, 128>}, {transform_indices = @transform_2, window_bounds = array<i64: 8, 128>}]} {
    %c0 = arith.constant 0 : index
    %c0_0 = arith.constant 0 : index
    %0 = vector.load %arg1[%c0, %c0_0] : memref<8x32xf32, #tpu.memory_space<vmem>>, vector<8x32xf32>
    %c0_1 = arith.constant 0 : index
    %c0_2 = arith.constant 0 : index
    %1 = vector.load %arg2[%c0_1, %c0_2] : memref<32x128xf32, #tpu.memory_space<vmem>>, vector<32x128xf32>
    %cst = arith.constant dense<0.000000e+00> : vector<8x128xf32>
    %2 = tpu.matmul %0, %1, %cst {dimension_numbers = #tpu.dot_dimension_numbers<[1], [0], [0], [1], [0, 0, 1, 1], [], []>} : vector<8x32xf32>, vector<32x128xf32>, vector<8x128xf32> -> vector<8x128xf32>
    %c0_3 = arith.constant 0 : index
    %c0_4 = arith.constant 0 : index
    %3 = vector.load %arg3[%c0_3, %c0_4] : memref<8x128xf32, #tpu.memory_space<vmem>>, vector<8x128xf32>
    tpu.vector_store %arg3[%c0_3, %c0_4], %2 {strides = array<i32>} : memref<8x128xf32, #tpu.memory_space<vmem>>, vector<8x128xf32>,
    return
  }
  func.func @transform_0(%arg0: i32) -> (i32, i32) {
    %c0_i32 = arith.constant 0 : i32
    %c0_i32_0 = arith.constant 0 : i32
    return %arg0, %c0_i32 : i32, i32
  }
  func.func @transform_1(%arg0: i32) -> (i32, i32) {
    %c0_i32 = arith.constant 0 : i32
    %c0_i32_0 = arith.constant 0 : i32
    %c0_i32_1 = arith.constant 0 : i32
    return %c0_i32, %c0_i32_0 : i32, i32
  }
  func.func @transform_2(%arg0: i32) -> (i32, i32) {
    %c0_i32 = arith.constant 0 : i32
    %c0_i32_0 = arith.constant 0 : i32
    return %arg0, %c0_i32 : i32, i32
  }
}

module attributes {stable_mosaic.version = 11 : i64} {
  func.func @_conv_bwd_kernel(%arg0: i32, %arg1: memref<8x128xf32, #tpu.memory_space<vmem>>, %arg2: memref<8x128xf32, #tpu.memory_space<vmem>>, %arg3: memref<128x128xf32, #tpu.memory_space<vmem>>, %arg4: memref<128x128xf32, #tpu.memory_space<vmem>>, %arg5: memref<8x128xf32, #tpu.memory_space<vmem>>, %arg6: memref<8x128xf32, #tpu.memory_space<vmem>>) attributes {dimension_semantics = [#tpu.dimension_semantics<parallel>], iteration_bounds = array<i64: 1>, scalar_prefetch = 0 : i64, scratch_operands = 0 : i64, tpu.core_type = #tpu.core_type<tc>, window_params = [{transform_indices = @transform_0, window_bounds = array<i64: 8, 128>}, {transform_indices = @transform_1, window_bounds = array<i64: 8, 128>}, {pipeline_mode = #tpu.pipeline_mode<synchronous>, transform_indices = @transform_2, window_bounds = array<i64: 128, 128>}, {pipeline_mode = #tpu.pipeline_mode<synchronous>, transform_indices = @transform_3, window_bounds = array<i64: 128, 128>}, {transform_indices = @transform_4, window_bounds = array<i64: 8, 128>}, {transform_indices = @transform_5, window_bounds = array<i64: 8, 128>}]} {
    %c0 = arith.constant 0 : index
    %c0_0 = arith.constant 0 : index
    %0 = vector.load %arg1[%c0, %c0_0] : memref<8x128xf32, #tpu.memory_space<vmem>>, vector<8x128xf32>
    %c0_1 = arith.constant 0 : index
    %c0_2 = arith.constant 0 : index
    %1 = vector.load %arg2[%c0_1, %c0_2] : memref<8x128xf32, #tpu.memory_space<vmem>>, vector<8x128xf32>
    %cst = arith.constant 0.000000e+00 : f32
    %2 = vector.broadcast %cst : f32 to vector<8x128xf32>
    %3 = arith.subf %2, %1 : vector<8x128xf32>
    %4 = math.exp %3 : vector<8x128xf32>
    %cst_3 = arith.constant 1.000000e+00 : f32
    %5 = vector.broadcast %cst_3 : f32 to vector<8x128xf32>
    %6 = arith.addf %5, %4 : vector<8x128xf32>
    %cst_4 = arith.constant 1.000000e+00 : f32
    %7 = vector.broadcast %cst_4 : f32 to vector<8x128xf32>
    %8 = arith.divf %7, %6 : vector<8x128xf32>
    %cst_5 = arith.constant 1.000000e+00 : f32
    %9 = vector.broadcast %cst_5 : f32 to vector<8x128xf32>
    %10 = arith.subf %9, %8 : vector<8x128xf32>
    %11 = arith.mulf %1, %10 : vector<8x128xf32>
    %cst_6 = arith.constant 1.000000e+00 : f32
    %12 = vector.broadcast %cst_6 : f32 to vector<8x128xf32>
    %13 = arith.addf %12, %11 : vector<8x128xf32>
    %14 = arith.mulf %8, %13 : vector<8x128xf32>
    %15 = arith.mulf %0, %14 : vector<8x128xf32>
    %c0_7 = arith.constant 0 : index
    %c0_8 = arith.constant 0 : index
    %16 = vector.load %arg3[%c0_7, %c0_8] : memref<128x128xf32, #tpu.memory_space<vmem>>, vector<128x128xf32>
    %cst_9 = arith.constant dense<0.000000e+00> : vector<8x128xf32>
    %17 = tpu.matmul %15, %16, %cst_9 {dimension_numbers = #tpu.dot_dimension_numbers<[1], [0], [0], [1], [0, 0, 1, 1], [], []>} : vector<8x128xf32>, vector<128x128xf32>, vector<8x128xf32> -> vector<8x128xf32>
    %c0_10 = arith.constant 0 : index
    %c0_11 = arith.constant 0 : index
    %18 = vector.load %arg5[%c0_10, %c0_11] : memref<8x128xf32, #tpu.memory_space<vmem>>, vector<8x128xf32>
    tpu.vector_store %arg5[%c0_10, %c0_11], %17 {strides = array<i32>} : memref<8x128xf32, #tpu.memory_space<vmem>>, vector<8x128xf32>,
    %c0_12 = arith.constant 0 : index
    %c0_13 = arith.constant 0 : index
    %19 = vector.load %arg1[%c0_12, %c0_13] : memref<8x128xf32, #tpu.memory_space<vmem>>, vector<8x128xf32>
    %c0_14 = arith.constant 0 : index
    %c0_15 = arith.constant 0 : index
    %20 = vector.load %arg4[%c0_14, %c0_15] : memref<128x128xf32, #tpu.memory_space<vmem>>, vector<128x128xf32>
    %cst_16 = arith.constant dense<0.000000e+00> : vector<8x128xf32>
    %21 = tpu.matmul %15, %20, %cst_16 {dimension_numbers = #tpu.dot_dimension_numbers<[1], [0], [0], [1], [0, 0, 1, 1], [], []>} : vector<8x128xf32>, vector<128x128xf32>, vector<8x128xf32> -> vector<8x128xf32>
    %22 = arith.addf %19, %21 : vector<8x128xf32>
    %c0_17 = arith.constant 0 : index
    %c0_18 = arith.constant 0 : index
    %23 = vector.load %arg6[%c0_17, %c0_18] : memref<8x128xf32, #tpu.memory_space<vmem>>, vector<8x128xf32>
    tpu.vector_store %arg6[%c0_17, %c0_18], %22 {strides = array<i32>} : memref<8x128xf32, #tpu.memory_space<vmem>>, vector<8x128xf32>,
    return
  }
  func.func @transform_0(%arg0: i32) -> (i32, i32) {
    %c0_i32 = arith.constant 0 : i32
    %c0_i32_0 = arith.constant 0 : i32
    return %arg0, %c0_i32 : i32, i32
  }
  func.func @transform_1(%arg0: i32) -> (i32, i32) {
    %c0_i32 = arith.constant 0 : i32
    %c0_i32_0 = arith.constant 0 : i32
    return %arg0, %c0_i32 : i32, i32
  }
  func.func @transform_2(%arg0: i32) -> (i32, i32) {
    %c0_i32 = arith.constant 0 : i32
    %c0_i32_0 = arith.constant 0 : i32
    %c0_i32_1 = arith.constant 0 : i32
    return %c0_i32, %c0_i32_0 : i32, i32
  }
  func.func @transform_3(%arg0: i32) -> (i32, i32) {
    %c0_i32 = arith.constant 0 : i32
    %c0_i32_0 = arith.constant 0 : i32
    %c0_i32_1 = arith.constant 0 : i32
    return %c0_i32, %c0_i32_0 : i32, i32
  }
  func.func @transform_4(%arg0: i32) -> (i32, i32) {
    %c0_i32 = arith.constant 0 : i32
    %c0_i32_0 = arith.constant 0 : i32
    return %arg0, %c0_i32 : i32, i32
  }
  func.func @transform_5(%arg0: i32) -> (i32, i32) {
    %c0_i32 = arith.constant 0 : i32
    %c0_i32_0 = arith.constant 0 : i32
    return %arg0, %c0_i32 : i32, i32
  }
}

module attributes {stable_mosaic.version = 11 : i64} {
  func.func @_radial_bwd_kernel(%arg0: i32, %arg1: memref<8x128xf32, #tpu.memory_space<vmem>>, %arg2: memref<8x512xf32, #tpu.memory_space<vmem>>, %arg3: memref<128x256xf32, #tpu.memory_space<vmem>>, %arg4: memref<512x256xf32, #tpu.memory_space<vmem>>, %arg5: memref<256x128xf32, #tpu.memory_space<vmem>>, %arg6: memref<8x128xf32, #tpu.memory_space<vmem>>) attributes {dimension_semantics = [#tpu.dimension_semantics<parallel>], iteration_bounds = array<i64: 1>, scalar_prefetch = 0 : i64, scratch_operands = 0 : i64, tpu.core_type = #tpu.core_type<tc>, window_params = [{transform_indices = @transform_0, window_bounds = array<i64: 8, 128>}, {transform_indices = @transform_1, window_bounds = array<i64: 8, 512>}, {pipeline_mode = #tpu.pipeline_mode<synchronous>, transform_indices = @transform_2, window_bounds = array<i64: 128, 256>}, {pipeline_mode = #tpu.pipeline_mode<synchronous>, transform_indices = @transform_3, window_bounds = array<i64: 512, 256>}, {pipeline_mode = #tpu.pipeline_mode<synchronous>, transform_indices = @transform_4, window_bounds = array<i64: 256, 128>}, {transform_indices = @transform_5, window_bounds = array<i64: 8, 128>}]} {
    %c0 = arith.constant 0 : index
    %c0_0 = arith.constant 0 : index
    %0 = vector.load %arg1[%c0, %c0_0] : memref<8x128xf32, #tpu.memory_space<vmem>>, vector<8x128xf32>
    %c0_1 = arith.constant 0 : index
    %c0_2 = arith.constant 0 : index
    %1 = vector.load %arg3[%c0_1, %c0_2] : memref<128x256xf32, #tpu.memory_space<vmem>>, vector<128x256xf32>
    %cst = arith.constant dense<0.000000e+00> : vector<8x256xf32>
    %2 = tpu.matmul %0, %1, %cst {dimension_numbers = #tpu.dot_dimension_numbers<[1], [0], [0], [1], [0, 0, 1, 1], [], []>} : vector<8x128xf32>, vector<128x256xf32>, vector<8x256xf32> -> vector<8x256xf32>
    %c0_3 = arith.constant 0 : index
    %c0_4 = arith.constant 0 : index
    %3 = vector.load %arg2[%c0_3, %c0_4] : memref<8x512xf32, #tpu.memory_space<vmem>>, vector<8x512xf32>
    %c0_5 = arith.constant 0 : index
    %c0_6 = arith.constant 0 : index
    %4 = vector.load %arg4[%c0_5, %c0_6] : memref<512x256xf32, #tpu.memory_space<vmem>>, vector<512x256xf32>
    %cst_7 = arith.constant dense<0.000000e+00> : vector<8x256xf32>
    %5 = tpu.matmul %3, %4, %cst_7 {dimension_numbers = #tpu.dot_dimension_numbers<[1], [0], [0], [1], [0, 0, 1, 1], [], []>} : vector<8x512xf32>, vector<512x256xf32>, vector<8x256xf32> -> vector<8x256xf32>
    %cst_8 = arith.constant 0.000000e+00 : f32
    %6 = vector.broadcast %cst_8 : f32 to vector<8x256xf32>
    %7 = arith.subf %6, %2 : vector<8x256xf32>
    %8 = math.exp %7 : vector<8x256xf32>
    %cst_9 = arith.constant 1.000000e+00 : f32
    %9 = vector.broadcast %cst_9 : f32 to vector<8x256xf32>
    %10 = arith.addf %9, %8 : vector<8x256xf32>
    %cst_10 = arith.constant 1.000000e+00 : f32
    %11 = vector.broadcast %cst_10 : f32 to vector<8x256xf32>
    %12 = arith.divf %11, %10 : vector<8x256xf32>
    %cst_11 = arith.constant 1.000000e+00 : f32
    %13 = vector.broadcast %cst_11 : f32 to vector<8x256xf32>
    %14 = arith.subf %13, %12 : vector<8x256xf32>
    %15 = arith.mulf %2, %14 : vector<8x256xf32>
    %cst_12 = arith.constant 1.000000e+00 : f32
    %16 = vector.broadcast %cst_12 : f32 to vector<8x256xf32>
    %17 = arith.addf %16, %15 : vector<8x256xf32>
    %18 = arith.mulf %12, %17 : vector<8x256xf32>
    %19 = arith.mulf %5, %18 : vector<8x256xf32>
    %c0_13 = arith.constant 0 : index
    %c0_14 = arith.constant 0 : index
    %20 = vector.load %arg5[%c0_13, %c0_14] : memref<256x128xf32, #tpu.memory_space<vmem>>, vector<256x128xf32>
    %cst_15 = arith.constant dense<0.000000e+00> : vector<8x128xf32>
    %21 = tpu.matmul %19, %20, %cst_15 {dimension_numbers = #tpu.dot_dimension_numbers<[1], [0], [0], [1], [0, 0, 1, 1], [], []>} : vector<8x256xf32>, vector<256x128xf32>, vector<8x128xf32> -> vector<8x128xf32>
    %c0_16 = arith.constant 0 : index
    %c0_17 = arith.constant 0 : index
    %22 = vector.load %arg6[%c0_16, %c0_17] : memref<8x128xf32, #tpu.memory_space<vmem>>, vector<8x128xf32>
    tpu.vector_store %arg6[%c0_16, %c0_17], %21 {strides = array<i32>} : memref<8x128xf32, #tpu.memory_space<vmem>>, vector<8x128xf32>,
    return
  }
  func.func @transform_0(%arg0: i32) -> (i32, i32) {
    %c0_i32 = arith.constant 0 : i32
    %c0_i32_0 = arith.constant 0 : i32
    return %arg0, %c0_i32 : i32, i32
  }
  func.func @transform_1(%arg0: i32) -> (i32, i32) {
    %c0_i32 = arith.constant 0 : i32
    %c0_i32_0 = arith.constant 0 : i32
    return %arg0, %c0_i32 : i32, i32
  }
  func.func @transform_2(%arg0: i32) -> (i32, i32) {
    %c0_i32 = arith.constant 0 : i32
    %c0_i32_0 = arith.constant 0 : i32
    %c0_i32_1 = arith.constant 0 : i32
    return %c0_i32, %c0_i32_0 : i32, i32
  }
  func.func @transform_3(%arg0: i32) -> (i32, i32) {
    %c0_i32 = arith.constant 0 : i32
    %c0_i32_0 = arith.constant 0 : i32
    %c0_i32_1 = arith.constant 0 : i32
    return %c0_i32, %c0_i32_0 : i32, i32
  }
  func.func @transform_4(%arg0: i32) -> (i32, i32) {
    %c0_i32 = arith.constant 0 : i32
    %c0_i32_0 = arith.constant 0 : i32
    %c0_i32_1 = arith.constant 0 : i32
    return %c0_i32, %c0_i32_0 : i32, i32
  }
  func.func @transform_5(%arg0: i32) -> (i32, i32) {
    %c0_i32 = arith.constant 0 : i32
    %c0_i32_0 = arith.constant 0 : i32
    return %arg0, %c0_i32 : i32, i32
  }
}

module attributes {stable_mosaic.version = 11 : i64} {
  func.func @_radial_bwd_kernel(%arg0: i32, %arg1: memref<8x128xf32, #tpu.memory_space<vmem>>, %arg2: memref<8x512xf32, #tpu.memory_space<vmem>>, %arg3: memref<128x256xf32, #tpu.memory_space<vmem>>, %arg4: memref<512x256xf32, #tpu.memory_space<vmem>>, %arg5: memref<256x128xf32, #tpu.memory_space<vmem>>, %arg6: memref<8x128xf32, #tpu.memory_space<vmem>>) attributes {dimension_semantics = [#tpu.dimension_semantics<parallel>], iteration_bounds = array<i64: 1>, scalar_prefetch = 0 : i64, scratch_operands = 0 : i64, tpu.core_type = #tpu.core_type<tc>, window_params = [{transform_indices = @transform_0, window_bounds = array<i64: 8, 128>}, {transform_indices = @transform_1, window_bounds = array<i64: 8, 512>}, {pipeline_mode = #tpu.pipeline_mode<synchronous>, transform_indices = @transform_2, window_bounds = array<i64: 128, 256>}, {pipeline_mode = #tpu.pipeline_mode<synchronous>, transform_indices = @transform_3, window_bounds = array<i64: 512, 256>}, {pipeline_mode = #tpu.pipeline_mode<synchronous>, transform_indices = @transform_4, window_bounds = array<i64: 256, 128>}, {transform_indices = @transform_5, window_bounds = array<i64: 8, 128>}]} {
    %c0 = arith.constant 0 : index
    %c0_0 = arith.constant 0 : index
    %0 = vector.load %arg1[%c0, %c0_0] : memref<8x128xf32, #tpu.memory_space<vmem>>, vector<8x128xf32>
    %c0_1 = arith.constant 0 : index
    %c0_2 = arith.constant 0 : index
    %1 = vector.load %arg3[%c0_1, %c0_2] : memref<128x256xf32, #tpu.memory_space<vmem>>, vector<128x256xf32>
    %cst = arith.constant dense<0.000000e+00> : vector<8x256xf32>
    %2 = tpu.matmul %0, %1, %cst {dimension_numbers = #tpu.dot_dimension_numbers<[1], [0], [0], [1], [0, 0, 1, 1], [], []>} : vector<8x128xf32>, vector<128x256xf32>, vector<8x256xf32> -> vector<8x256xf32>
    %c0_3 = arith.constant 0 : index
    %c0_4 = arith.constant 0 : index
    %3 = vector.load %arg2[%c0_3, %c0_4] : memref<8x512xf32, #tpu.memory_space<vmem>>, vector<8x512xf32>
    %c0_5 = arith.constant 0 : index
    %c0_6 = arith.constant 0 : index
    %4 = vector.load %arg4[%c0_5, %c0_6] : memref<512x256xf32, #tpu.memory_space<vmem>>, vector<512x256xf32>
    %cst_7 = arith.constant dense<0.000000e+00> : vector<8x256xf32>
    %5 = tpu.matmul %3, %4, %cst_7 {dimension_numbers = #tpu.dot_dimension_numbers<[1], [0], [0], [1], [0, 0, 1, 1], [], []>} : vector<8x512xf32>, vector<512x256xf32>, vector<8x256xf32> -> vector<8x256xf32>
    %cst_8 = arith.constant 0.000000e+00 : f32
    %6 = vector.broadcast %cst_8 : f32 to vector<8x256xf32>
    %7 = arith.subf %6, %2 : vector<8x256xf32>
    %8 = math.exp %7 : vector<8x256xf32>
    %cst_9 = arith.constant 1.000000e+00 : f32
    %9 = vector.broadcast %cst_9 : f32 to vector<8x256xf32>
    %10 = arith.addf %9, %8 : vector<8x256xf32>
    %cst_10 = arith.constant 1.000000e+00 : f32
    %11 = vector.broadcast %cst_10 : f32 to vector<8x256xf32>
    %12 = arith.divf %11, %10 : vector<8x256xf32>
    %cst_11 = arith.constant 1.000000e+00 : f32
    %13 = vector.broadcast %cst_11 : f32 to vector<8x256xf32>
    %14 = arith.subf %13, %12 : vector<8x256xf32>
    %15 = arith.mulf %2, %14 : vector<8x256xf32>
    %cst_12 = arith.constant 1.000000e+00 : f32
    %16 = vector.broadcast %cst_12 : f32 to vector<8x256xf32>
    %17 = arith.addf %16, %15 : vector<8x256xf32>
    %18 = arith.mulf %12, %17 : vector<8x256xf32>
    %19 = arith.mulf %5, %18 : vector<8x256xf32>
    %c0_13 = arith.constant 0 : index
    %c0_14 = arith.constant 0 : index
    %20 = vector.load %arg5[%c0_13, %c0_14] : memref<256x128xf32, #tpu.memory_space<vmem>>, vector<256x128xf32>
    %cst_15 = arith.constant dense<0.000000e+00> : vector<8x128xf32>
    %21 = tpu.matmul %19, %20, %cst_15 {dimension_numbers = #tpu.dot_dimension_numbers<[1], [0], [0], [1], [0, 0, 1, 1], [], []>} : vector<8x256xf32>, vector<256x128xf32>, vector<8x128xf32> -> vector<8x128xf32>
    %c0_16 = arith.constant 0 : index
    %c0_17 = arith.constant 0 : index
    %22 = vector.load %arg6[%c0_16, %c0_17] : memref<8x128xf32, #tpu.memory_space<vmem>>, vector<8x128xf32>
    tpu.vector_store %arg6[%c0_16, %c0_17], %21 {strides = array<i32>} : memref<8x128xf32, #tpu.memory_space<vmem>>, vector<8x128xf32>,
    return
  }
  func.func @transform_0(%arg0: i32) -> (i32, i32) {
    %c0_i32 = arith.constant 0 : i32
    %c0_i32_0 = arith.constant 0 : i32
    return %arg0, %c0_i32 : i32, i32
  }
  func.func @transform_1(%arg0: i32) -> (i32, i32) {
    %c0_i32 = arith.constant 0 : i32
    %c0_i32_0 = arith.constant 0 : i32
    return %arg0, %c0_i32 : i32, i32
  }
  func.func @transform_2(%arg0: i32) -> (i32, i32) {
    %c0_i32 = arith.constant 0 : i32
    %c0_i32_0 = arith.constant 0 : i32
    %c0_i32_1 = arith.constant 0 : i32
    return %c0_i32, %c0_i32_0 : i32, i32
  }
  func.func @transform_3(%arg0: i32) -> (i32, i32) {
    %c0_i32 = arith.constant 0 : i32
    %c0_i32_0 = arith.constant 0 : i32
    %c0_i32_1 = arith.constant 0 : i32
    return %c0_i32, %c0_i32_0 : i32, i32
  }
  func.func @transform_4(%arg0: i32) -> (i32, i32) {
    %c0_i32 = arith.constant 0 : i32
    %c0_i32_0 = arith.constant 0 : i32
    %c0_i32_1 = arith.constant 0 : i32
    return %c0_i32, %c0_i32_0 : i32, i32
  }
  func.func @transform_5(%arg0: i32) -> (i32, i32) {
    %c0_i32 = arith.constant 0 : i32
    %c0_i32_0 = arith.constant 0 : i32
    return %arg0, %c0_i32 : i32, i32
  }
}

module attributes {stable_mosaic.version = 11 : i64} {
  func.func @_linear_kernel(%arg0: i32, %arg1: memref<8x128xf32, #tpu.memory_space<vmem>>, %arg2: memref<128x32xf32, #tpu.memory_space<vmem>>, %arg3: memref<8x32xf32, #tpu.memory_space<vmem>>) attributes {dimension_semantics = [#tpu.dimension_semantics<parallel>], iteration_bounds = array<i64: 1>, scalar_prefetch = 0 : i64, scratch_operands = 0 : i64, tpu.core_type = #tpu.core_type<tc>, window_params = [{transform_indices = @transform_0, window_bounds = array<i64: 8, 128>}, {pipeline_mode = #tpu.pipeline_mode<synchronous>, transform_indices = @transform_1, window_bounds = array<i64: 128, 32>}, {transform_indices = @transform_2, window_bounds = array<i64: 8, 32>}]} {
    %c0 = arith.constant 0 : index
    %c0_0 = arith.constant 0 : index
    %0 = vector.load %arg1[%c0, %c0_0] : memref<8x128xf32, #tpu.memory_space<vmem>>, vector<8x128xf32>
    %c0_1 = arith.constant 0 : index
    %c0_2 = arith.constant 0 : index
    %1 = vector.load %arg2[%c0_1, %c0_2] : memref<128x32xf32, #tpu.memory_space<vmem>>, vector<128x32xf32>
    %cst = arith.constant dense<0.000000e+00> : vector<8x32xf32>
    %2 = tpu.matmul %0, %1, %cst {dimension_numbers = #tpu.dot_dimension_numbers<[1], [0], [0], [1], [0, 0, 1, 1], [], []>} : vector<8x128xf32>, vector<128x32xf32>, vector<8x32xf32> -> vector<8x32xf32>
    %c0_3 = arith.constant 0 : index
    %c0_4 = arith.constant 0 : index
    %3 = vector.load %arg3[%c0_3, %c0_4] : memref<8x32xf32, #tpu.memory_space<vmem>>, vector<8x32xf32>
    tpu.vector_store %arg3[%c0_3, %c0_4], %2 {strides = array<i32>} : memref<8x32xf32, #tpu.memory_space<vmem>>, vector<8x32xf32>,
    return
  }
  func.func @transform_0(%arg0: i32) -> (i32, i32) {
    %c0_i32 = arith.constant 0 : i32
    %c0_i32_0 = arith.constant 0 : i32
    return %arg0, %c0_i32 : i32, i32
  }
  func.func @transform_1(%arg0: i32) -> (i32, i32) {
    %c0_i32 = arith.constant 0 : i32
    %c0_i32_0 = arith.constant 0 : i32
    %c0_i32_1 = arith.constant 0 : i32
    return %c0_i32, %c0_i32_0 : i32, i32
  }
  func.func @transform_2(%arg0: i32) -> (i32, i32) {
    %c0_i32 = arith.constant 0 : i32
    %c0_i32_0 = arith.constant 0 : i32
    return %arg0, %c0_i32 : i32, i32
  }
}

</mosaic_0001>

<bundles_post_ra>
// kernel: jvp__.5
= control target key start
LH: loop header
LB: loop body
LE: loop exit
PB: predicated region body
PF: predicated region fallthrough
CT: control target
= control target key end

     0   :  { %s954_s1 = inlined_call_operand.vmem [shape: f32[128,256], index: 1, kind: input, shape index: {}]   ;;  %s955_s2 = inlined_call_operand.vmem [shape: f32[256,512], index: 2, kind: input, shape index: {}]   ;;  %s956_s0 = inlined_call_operand.vmem [shape: f32[8,128], index: 0, kind: input, shape index: {}]   ;;  %s957_s3 = inlined_call_operand.vmem [shape: f32[8,512], index: 3, kind: output, shape index: {}]  }
   0x1   :  { %v45_v0 = vld [vmem:[%s954_s1 + $0xf0] sm:$0xff]  ;;  %v46_v1 = vld [vmem:[%s954_s1 + $0xf8] sm:$0xff]  ;;  %v43_v2 = vld [vmem:[%s954_s1 + $0xe0] sm:$0xff] }
   0x2   :  { %47 = vmatpush.msra.mxu0 %v45_v0  ;;  %67 = vmatpush.msra.mxu1 %v46_v1  ;;  %v44_v3 = vld [vmem:[%s954_s1 + $0xe8] sm:$0xff]  ;;  %v41_v4 = vld [vmem:[%s954_s1 + $0xd0] sm:$0xff]  ;;  %v42_v5 = vld [vmem:[%s954_s1 + $0xd8] sm:$0xff] }
   0x3   :  { %v39_v6 = vld [vmem:[%s954_s1 + $0xc0] sm:$0xff]  ;;  %v40_v7 = vld [vmem:[%s954_s1 + $0xc8] sm:$0xff]  ;;  %v37_v8 = vld [vmem:[%s954_s1 + $0xb0] sm:$0xff] }
   0x4   :  { %48 = vmatpush.msra.mxu0 %v43_v2  ;;  %68 = vmatpush.msra.mxu1 %v44_v3  ;;  %v38_v9 = vld [vmem:[%s954_s1 + $0xb8] sm:$0xff]  ;;  %v35_v10 = vld [vmem:[%s954_s1 + $0xa0] sm:$0xff]  ;;  %v36_v11 = vld [vmem:[%s954_s1 + $0xa8] sm:$0xff] }
   0x5   :  { %v33_v12 = vld [vmem:[%s954_s1 + $0x90] sm:$0xff]  ;;  %v34_v13 = vld [vmem:[%s954_s1 + $0x98] sm:$0xff]  ;;  %v31_v14 = vld [vmem:[%s954_s1 + $0x80] sm:$0xff] }
   0x6   :  { %49 = vmatpush.msra.mxu0 %v41_v4  ;;  %69 = vmatpush.msra.mxu1 %v42_v5  ;;  %v187_v15 = vld [vmem:[%s955_s2 + $0x1e0] sm:$0xff]  ;;  %v32_v17 = vld [vmem:[%s954_s1 + $0x88] sm:$0xff]  ;;  %v29_v21 = vld [vmem:[%s954_s1 + $0x70] sm:$0xff] }
   0x7   :  { %v251_v16 = vld [vmem:[%s955_s2 + $0x3e0] sm:$0xff]  ;;  %255 = vmatpush.msra.mxu2 %v187_v15  ;;  %v30_v22 = vld [vmem:[%s954_s1 + $0x78] sm:$0xff]  ;;  %v28_v27 = vld [vmem:[%s954_s1 + $0x68] sm:$0xff] }
   0x8   :  { %50 = vmatpush.msra.mxu0 %v39_v6  ;;  %70 = vmatpush.msra.mxu1 %v40_v7  ;;  %v183_v18 = vld [vmem:[%s955_s2 + $0x1c0] sm:$0xff]  ;;  %v25_v30 = vld [vmem:[%s954_s1 + $0x50] sm:$0xff]  ;;  %v26_v31 = vld [vmem:[%s954_s1 + $0x58] sm:$0xff] }
   0x9   :  { %275 = vmatpush.msra.mxu3 %v251_v16  ;;  %v247_v19 = vld [vmem:[%s955_s2 + $0x3c0] sm:$0xff]  ;;  %256 = vmatpush.msra.mxu2 %v183_v18  ;;  %v24_v35 = vld [vmem:[%s954_s1 + $0x48] sm:$0xff]  ;;  %v21_v38 = vld [vmem:[%s954_s1 + $0x30] sm:$0xff] }
   0xa   :  { %51 = vmatpush.msra.mxu0 %v37_v8  ;;  %71 = vmatpush.msra.mxu1 %v38_v9  ;;  %v179_v20 = vld [vmem:[%s955_s2 + $0x1a0] sm:$0xff]  ;;  %v22_v39 = vld [vmem:[%s954_s1 + $0x38] sm:$0xff]  ;;  %v20_v43 = vld [vmem:[%s954_s1 + $0x28] sm:$0xff] }
   0xb   :  { %276 = vmatpush.msra.mxu3 %v247_v19  ;;  %v243_v23 = vld [vmem:[%s955_s2 + $0x3a0] sm:$0xff]  ;;  %257 = vmatpush.msra.mxu2 %v179_v20  ;;  %v17_v46 = vld [vmem:[%s954_s1 + $0x10] sm:$0xff]  ;;  %v18_v47 = vld [vmem:[%s954_s1 + $0x18] sm:$0xff] }
   0xc   :  { %52 = vmatpush.msra.mxu0 %v35_v10  ;;  %72 = vmatpush.msra.mxu1 %v36_v11  ;;  %v175_v24 = vld [vmem:[%s955_s2 + $0x180] sm:$0xff]  ;;  %v16_v51 = vld [vmem:[%s954_s1 + $0x8] sm:$0xff] }
   0xd   :  { %v239_v25 = vld [vmem:[%s955_s2 + $0x380] sm:$0xff]  ;;  %277 = vmatpush.msra.mxu3 %v243_v23  ;;  %258 = vmatpush.msra.mxu2 %v175_v24  ;;  %v188_v53 = vld [vmem:[%s955_s2 + $0x1e8] sm:$0xff] }
   0xe   :  { %53 = vmatpush.msra.mxu0 %v33_v12  ;;  %73 = vmatpush.msra.mxu1 %v34_v13  ;;  %v27_v26 = vld [vmem:[%s954_s1 + $0x60] sm:$0xff]  ;;  %v252_v54 = vld [vmem:[%s955_s2 + $0x3e8] sm:$0xff] }
   0xf   :  { %v171_v28 = vld [vmem:[%s955_s2 + $0x160] sm:$0xff]  ;;  %278 = vmatpush.msra.mxu3 %v239_v25  ;;  %v184_v57 = vld [vmem:[%s955_s2 + $0x1c8] sm:$0xff] }
  0x10   :  { %54 = vmatpush.msra.mxu0 %v31_v14  ;;  %74 = vmatpush.msra.mxu1 %v32_v17  ;;  %v235_v29 = vld [vmem:[%s955_s2 + $0x360] sm:$0xff]  ;;  %v248_v58 = vld [vmem:[%s955_s2 + $0x3c8] sm:$0xff] }
  0x11   :  { %v167_v32 = vld [vmem:[%s955_s2 + $0x140] sm:$0xff]  ;;  %259 = vmatpush.msra.mxu2 %v171_v28  ;;  %279 = vmatpush.msra.mxu3 %v235_v29  ;;  %v180_v59 = vld [vmem:[%s955_s2 + $0x1a8] sm:$0xff] }
  0x12   :  { %55 = vmatpush.msra.mxu0 %v29_v21  ;;  %75 = vmatpush.msra.mxu1 %v30_v22  ;;  %v231_v33 = vld [vmem:[%s955_s2 + $0x340] sm:$0xff]  ;;  %v244_v60 = vld [vmem:[%s955_s2 + $0x3a8] sm:$0xff] }
  0x13   :  { %v23_v34 = vld [vmem:[%s954_s1 + $0x40] sm:$0xff]  ;;  %260 = vmatpush.msra.mxu2 %v167_v32  ;;  %280 = vmatpush.msra.mxu3 %v231_v33  ;;  %v176_v61 = vld [vmem:[%s955_s2 + $0x188] sm:$0xff]  ;;  %v189_v33 = vld [vmem:[%s955_s2 + $0x1f0] sm:$0xff] }
  0x14   :  { %56 = vmatpush.msra.mxu0 %v27_v26  ;;  %76 = vmatpush.msra.mxu1 %v28_v27  ;;  %v163_v36 = vld [vmem:[%s955_s2 + $0x120] sm:$0xff]  ;;  %v240_v62 = vld [vmem:[%s955_s2 + $0x388] sm:$0xff] }
  0x15   :  { %v227_v37 = vld [vmem:[%s955_s2 + $0x320] sm:$0xff]  ;;  %261 = vmatpush.msra.mxu2 %v163_v36  ;;  %v172_v63 = vld [vmem:[%s955_s2 + $0x168] sm:$0xff]  ;;  %v254_v36 = vld [vmem:[%s955_s2 + $0x3f8] sm:$0xff] }
  0x16   :  { %57 = vmatpush.msra.mxu0 %v25_v30  ;;  %77 = vmatpush.msra.mxu1 %v26_v31  ;;  %v159_v40 = vld [vmem:[%s955_s2 + $0x100] sm:$0xff]  ;;  %v236_v0 = vld [vmem:[%s955_s2 + $0x368] sm:$0xff] }
  0x17   :  { %v223_v41 = vld [vmem:[%s955_s2 + $0x300] sm:$0xff]  ;;  %281 = vmatpush.msra.mxu3 %v227_v37  ;;  %262 = vmatpush.msra.mxu2 %v159_v40  ;;  %v168_v1 = vld [vmem:[%s955_s2 + $0x148] sm:$0xff]  ;;  %v185_v37 = vld [vmem:[%s955_s2 + $0x1d0] sm:$0xff] }
  0x18   :  { %58 = vmatpush.msra.mxu0 %v23_v34  ;;  %78 = vmatpush.msra.mxu1 %v24_v35  ;;  %v19_v42 = vld [vmem:[%s954_s1 + $0x20] sm:$0xff]  ;;  %v232_v2 = vld [vmem:[%s955_s2 + $0x348] sm:$0xff]  ;;  %v253_v34 = vld [vmem:[%s955_s2 + $0x3f0] sm:$0xff] }
  0x19   :  { %v155_v44 = vld [vmem:[%s955_s2 + $0xe0] sm:$0xff]  ;;  %282 = vmatpush.msra.mxu3 %v223_v41  ;;  %v164_v3 = vld [vmem:[%s955_s2 + $0x128] sm:$0xff]  ;;  %v190_v35 = vld [vmem:[%s955_s2 + $0x1f8] sm:$0xff] }
  0x1a   :  { %59 = vmatpush.msra.mxu0 %v21_v38  ;;  %79 = vmatpush.msra.mxu1 %v22_v39  ;;  %v219_v45 = vld [vmem:[%s955_s2 + $0x2e0] sm:$0xff]  ;;  %v228_v4 = vld [vmem:[%s955_s2 + $0x328] sm:$0xff]  ;;  %v249_v38 = vld [vmem:[%s955_s2 + $0x3d0] sm:$0xff] }
  0x1b   :  { %v151_v48 = vld [vmem:[%s955_s2 + $0xc0] sm:$0xff]  ;;  %263 = vmatpush.msra.mxu2 %v155_v44  ;;  %283 = vmatpush.msra.mxu3 %v219_v45  ;;  %v160_v5 = vld [vmem:[%s955_s2 + $0x108] sm:$0xff]  ;;  %v186_v39 = vld [vmem:[%s955_s2 + $0x1d8] sm:$0xff] }
  0x1c   :  { %60 = vmatpush.msra.mxu0 %v19_v42  ;;  %80 = vmatpush.msra.mxu1 %v20_v43  ;;  %v215_v49 = vld [vmem:[%s955_s2 + $0x2c0] sm:$0xff]  ;;  %v224_v6 = vld [vmem:[%s955_s2 + $0x308] sm:$0xff]  ;;  %v250_v40 = vld [vmem:[%s955_s2 + $0x3d8] sm:$0xff] }
  0x1d   :  { %v15_v50 = vld [vmem:[%s954_s1] sm:$0xff]  ;;  %264 = vmatpush.msra.mxu2 %v151_v48  ;;  %284 = vmatpush.msra.mxu3 %v215_v49  ;;  %v156_v7 = vld [vmem:[%s955_s2 + $0xe8] sm:$0xff]  ;;  %v181_v41 = vld [vmem:[%s955_s2 + $0x1b0] sm:$0xff] }
  0x1e   :  { %61 = vmatpush.msra.mxu0 %v17_v46  ;;  %81 = vmatpush.msra.mxu1 %v18_v47  ;;  %v14_v52 = vld [vmem:[%s956_s0] sm:$0xff]  ;;  %v220_v8 = vld [vmem:[%s955_s2 + $0x2e8] sm:$0xff]  ;;  %v245_v42 = vld [vmem:[%s955_s2 + $0x3b0] sm:$0xff] }
  0x1f   :  { %v147_v55 = vld [vmem:[%s955_s2 + $0xa0] sm:$0xff]  ;;  %v152_v9 = vld [vmem:[%s955_s2 + $0xc8] sm:$0xff]  ;;  %v182_v43 = vld [vmem:[%s955_s2 + $0x1b8] sm:$0xff] }
  0x20   :  { %62 = vmatpush.msra.mxu0 %v15_v50  ;;  %82 = vmatpush.msra.mxu1 %v16_v51  ;;  %v211_v56 = vld [vmem:[%s955_s2 + $0x2a0] sm:$0xff]  ;;  %v216_v10 = vld [vmem:[%s955_s2 + $0x2c8] sm:$0xff]  ;;  %v246_v44 = vld [vmem:[%s955_s2 + $0x3b8] sm:$0xff] }
  0x21   :  { %63 = vmatmul.f32.vlgmr.msra.gmra.mxu0 %v14_v52  ;;  %83 = vmatmul.f32.vlgmr.msra.gmra.mxu1 %v14_v52  ;;  %v148_v11 = vld [vmem:[%s955_s2 + $0xa8] sm:$0xff]  ;;  %v143_v13 = vld [vmem:[%s955_s2 + $0x80] sm:$0xff]  ;;  %v177_v45 = vld [vmem:[%s955_s2 + $0x190] sm:$0xff] }
  0x22   :  { %295 = vmatpush.msrb.mxu0 %v188_v53  ;;  %315 = vmatpush.msrb.mxu1 %v252_v54  ;;  %v212_v12 = vld [vmem:[%s955_s2 + $0x2a8] sm:$0xff]  ;;  %v207_v14 = vld [vmem:[%s955_s2 + $0x280] sm:$0xff]  ;;  %v241_v46 = vld [vmem:[%s955_s2 + $0x390] sm:$0xff] }
  0x23   :  { %265 = vmatpush.msra.mxu2 %v147_v55  ;;  %285 = vmatpush.msra.mxu3 %v211_v56  ;;  %v144_v15 = vld [vmem:[%s955_s2 + $0x88] sm:$0xff]  ;;  %v139_v17 = vld [vmem:[%s955_s2 + $0x60] sm:$0xff]  ;;  %v178_v47 = vld [vmem:[%s955_s2 + $0x198] sm:$0xff] }
  0x24   :  { %296 = vmatpush.msrb.mxu0 %v184_v57  ;;  %316 = vmatpush.msrb.mxu1 %v248_v58  ;;  %v208_v16 = vld [vmem:[%s955_s2 + $0x288] sm:$0xff]  ;;  %v203_v18 = vld [vmem:[%s955_s2 + $0x260] sm:$0xff]  ;;  %v242_v48 = vld [vmem:[%s955_s2 + $0x398] sm:$0xff] }
  0x25   :  { %266 = vmatpush.msra.mxu2 %v143_v13  ;;  %286 = vmatpush.msra.mxu3 %v207_v14  ;;  %v140_v19 = vld [vmem:[%s955_s2 + $0x68] sm:$0xff]  ;;  %v135_v21 = vld [vmem:[%s955_s2 + $0x40] sm:$0xff]  ;;  %v173_v49 = vld [vmem:[%s955_s2 + $0x170] sm:$0xff] }
  0x26   :  { %297 = vmatpush.msrb.mxu0 %v180_v59  ;;  %317 = vmatpush.msrb.mxu1 %v244_v60  ;;  %v204_v20 = vld [vmem:[%s955_s2 + $0x268] sm:$0xff]  ;;  %v199_v22 = vld [vmem:[%s955_s2 + $0x240] sm:$0xff]  ;;  %v237_v50 = vld [vmem:[%s955_s2 + $0x370] sm:$0xff] }
  0x27   :  { %267 = vmatpush.msra.mxu2 %v139_v17  ;;  %287 = vmatpush.msra.mxu3 %v203_v18  ;;  %v136_v23 = vld [vmem:[%s955_s2 + $0x48] sm:$0xff]  ;;  %v131_v25 = vld [vmem:[%s955_s2 + $0x20] sm:$0xff]  ;;  %v174_v51 = vld [vmem:[%s955_s2 + $0x178] sm:$0xff] }
  0x28   :  { %298 = vmatpush.msrb.mxu0 %v176_v61  ;;  %318 = vmatpush.msrb.mxu1 %v240_v62  ;;  %v200_v24 = vld [vmem:[%s955_s2 + $0x248] sm:$0xff]  ;;  %v195_v26 = vld [vmem:[%s955_s2 + $0x220] sm:$0xff]  ;;  %v238_v52 = vld [vmem:[%s955_s2 + $0x378] sm:$0xff] }
  0x29   :  { %268 = vmatpush.msra.mxu2 %v135_v21  ;;  %288 = vmatpush.msra.mxu3 %v199_v22  ;;  %v132_v27 = vld [vmem:[%s955_s2 + $0x28] sm:$0xff]  ;;  %v127_v29 = vld [vmem:[%s955_s2] sm:$0xff]  ;;  %v169_v53 = vld [vmem:[%s955_s2 + $0x150] sm:$0xff] }
  0x2a   :  { %299 = vmatpush.msrb.mxu0 %v172_v63  ;;  %319 = vmatpush.msrb.mxu1 %v236_v0  ;;  %v196_v28 = vld [vmem:[%s955_s2 + $0x228] sm:$0xff]  ;;  %v191_v30 = vld [vmem:[%s955_s2 + $0x200] sm:$0xff]  ;;  %v233_v54 = vld [vmem:[%s955_s2 + $0x350] sm:$0xff] }
  0x2b   :  { %269 = vmatpush.msra.mxu2 %v131_v25  ;;  %289 = vmatpush.msra.mxu3 %v195_v26  ;;  %v128_v31 = vld [vmem:[%s955_s2 + $0x8] sm:$0xff]  ;;  %v170_v55 = vld [vmem:[%s955_s2 + $0x158] sm:$0xff]  ;;  %v165_v57 = vld [vmem:[%s955_s2 + $0x130] sm:$0xff] }
  0x2c   :  { %300 = vmatpush.msrb.mxu0 %v168_v1  ;;  %320 = vmatpush.msrb.mxu1 %v232_v2  ;;  %v192_v32 = vld [vmem:[%s955_s2 + $0x208] sm:$0xff]  ;;  %v234_v56 = vld [vmem:[%s955_s2 + $0x358] sm:$0xff]  ;;  %v229_v58 = vld [vmem:[%s955_s2 + $0x330] sm:$0xff] }
  0x2d   :  { %270 = vmatpush.msra.mxu2 %v127_v29  ;;  %290 = vmatpush.msra.mxu3 %v191_v30  ;;  %v166_v59 = vld [vmem:[%s955_s2 + $0x138] sm:$0xff]  ;;  %v161_v61 = vld [vmem:[%s955_s2 + $0x110] sm:$0xff] }
  0x2e   :  { %301 = vmatpush.msrb.mxu0 %v164_v3  ;;  %321 = vmatpush.msrb.mxu1 %v228_v4  ;;  %v230_v60 = vld [vmem:[%s955_s2 + $0x338] sm:$0xff]  ;;  %v225_v62 = vld [vmem:[%s955_s2 + $0x310] sm:$0xff] }
  0x2f   :  { %335 = vmatpush.msrb.mxu2 %v189_v33  ;;  %355 = vmatpush.msrb.mxu3 %v253_v34  ;;  %v162_v63 = vld [vmem:[%s955_s2 + $0x118] sm:$0xff]  ;;  %v157_v1 = vld [vmem:[%s955_s2 + $0xf0] sm:$0xff] }
  0x30   :  { %302 = vmatpush.msrb.mxu0 %v160_v5  ;;  %322 = vmatpush.msrb.mxu1 %v224_v6  ;;  %v226_v0 = vld [vmem:[%s955_s2 + $0x318] sm:$0xff]  ;;  %v221_v2 = vld [vmem:[%s955_s2 + $0x2f0] sm:$0xff] }
  0x31   :  { %336 = vmatpush.msrb.mxu2 %v185_v37  ;;  %356 = vmatpush.msrb.mxu3 %v249_v38  ;;  %v158_v3 = vld [vmem:[%s955_s2 + $0xf8] sm:$0xff]  ;;  %v153_v5 = vld [vmem:[%s955_s2 + $0xd0] sm:$0xff] }
  0x32   :  { %303 = vmatpush.msrb.mxu0 %v156_v7  ;;  %323 = vmatpush.msrb.mxu1 %v220_v8  ;;  %v222_v4 = vld [vmem:[%s955_s2 + $0x2f8] sm:$0xff]  ;;  %v217_v6 = vld [vmem:[%s955_s2 + $0x2d0] sm:$0xff] }
  0x33   :  { %337 = vmatpush.msrb.mxu2 %v181_v41  ;;  %357 = vmatpush.msrb.mxu3 %v245_v42  ;;  %v154_v7 = vld [vmem:[%s955_s2 + $0xd8] sm:$0xff]  ;;  %v141_v21 = vld [vmem:[%s955_s2 + $0x70] sm:$0xff] }
  0x34   :  { %304 = vmatpush.msrb.mxu0 %v152_v9  ;;  %324 = vmatpush.msrb.mxu1 %v216_v10  ;;  %v218_v8 = vld [vmem:[%s955_s2 + $0x2d8] sm:$0xff]  ;;  %v149_v9 = vld [vmem:[%s955_s2 + $0xb0] sm:$0xff] }
  0x35   :  { %338 = vmatpush.msrb.mxu2 %v177_v45  ;;  %358 = vmatpush.msrb.mxu3 %v241_v46  ;;  %v213_v10 = vld [vmem:[%s955_s2 + $0x2b0] sm:$0xff]  ;;  %v146_v17 = vld [vmem:[%s955_s2 + $0x98] sm:$0xff] }
  0x36   :  { %305 = vmatpush.msrb.mxu0 %v148_v11  ;;  %325 = vmatpush.msrb.mxu1 %v212_v12  ;;  %v150_v11 = vld [vmem:[%s955_s2 + $0xb8] sm:$0xff]  ;;  %v205_v22 = vld [vmem:[%s955_s2 + $0x270] sm:$0xff] }
  0x37   :  { %339 = vmatpush.msrb.mxu2 %v173_v49  ;;  %359 = vmatpush.msrb.mxu3 %v237_v50  ;;  %v214_v12 = vld [vmem:[%s955_s2 + $0x2b8] sm:$0xff] }
  0x38   :  { %306 = vmatpush.msrb.mxu0 %v144_v15  ;;  %326 = vmatpush.msrb.mxu1 %v208_v16  ;;  %v145_v15 = vld [vmem:[%s955_s2 + $0x90] sm:$0xff]  ;;  %v206_v26 = vld [vmem:[%s955_s2 + $0x278] sm:$0xff] }
  0x39   :  { %340 = vmatpush.msrb.mxu2 %v169_v53  ;;  %360 = vmatpush.msrb.mxu3 %v233_v54  ;;  %v209_v16 = vld [vmem:[%s955_s2 + $0x290] sm:$0xff]  ;;  %v138_v29 = vld [vmem:[%s955_s2 + $0x58] sm:$0xff] }
  0x3a   :  { %307 = vmatpush.msrb.mxu0 %v140_v19  ;;  %327 = vmatpush.msrb.mxu1 %v204_v20  ;;  %v210_v20 = vld [vmem:[%s955_s2 + $0x298] sm:$0xff] }
  0x3b   :  { %341 = vmatpush.msrb.mxu2 %v165_v57  ;;  %361 = vmatpush.msrb.mxu3 %v229_v58  ;;  %v202_v30 = vld [vmem:[%s955_s2 + $0x258] sm:$0xff] }
  0x3c   :  { %308 = vmatpush.msrb.mxu0 %v136_v23  ;;  %328 = vmatpush.msrb.mxu1 %v200_v24  ;;  %v142_v23 = vld [vmem:[%s955_s2 + $0x78] sm:$0xff] }
  0x3d   :  { %342 = vmatpush.msrb.mxu2 %v161_v61  ;;  %362 = vmatpush.msrb.mxu3 %v225_v62  ;;  %v134_v33 = vld [vmem:[%s955_s2 + $0x38] sm:$0xff] }
  0x3e   :  { %309 = vmatpush.msrb.mxu0 %v132_v27  ;;  %329 = vmatpush.msrb.mxu1 %v196_v28  ;;  %v137_v27 = vld [vmem:[%s955_s2 + $0x50] sm:$0xff]  ;;  %v198_v34 = vld [vmem:[%s955_s2 + $0x238] sm:$0xff] }
  0x3f   :  { %343 = vmatpush.msrb.mxu2 %v157_v1  ;;  %363 = vmatpush.msrb.mxu3 %v221_v2  ;;  %v201_v28 = vld [vmem:[%s955_s2 + $0x250] sm:$0xff]  ;;  %v130_v37 = vld [vmem:[%s955_s2 + $0x18] sm:$0xff] }
  0x40   :  { %310 = vmatpush.msrb.mxu0 %v128_v31  ;;  %330 = vmatpush.msrb.mxu1 %v192_v32  ;;  %v133_v31 = vld [vmem:[%s955_s2 + $0x30] sm:$0xff]  ;;  %v194_v38 = vld [vmem:[%s955_s2 + $0x218] sm:$0xff] }
  0x41   :  { %344 = vmatpush.msrb.mxu2 %v153_v5  ;;  %364 = vmatpush.msrb.mxu3 %v217_v6  ;;  %v197_v32 = vld [vmem:[%s955_s2 + $0x230] sm:$0xff] }
  0x42   :  { %375 = vmatpush.msra.mxu0 %v190_v35  ;;  %395 = vmatpush.msra.mxu1 %v254_v36  ;;  %v129_v35 = vld [vmem:[%s955_s2 + $0x10] sm:$0xff] }
  0x43   :  { %345 = vmatpush.msrb.mxu2 %v149_v9  ;;  %365 = vmatpush.msrb.mxu3 %v213_v10  ;;  %v193_v36 = vld [vmem:[%s955_s2 + $0x210] sm:$0xff] }
  0x44   :  { %376 = vmatpush.msra.mxu0 %v186_v39  ;;  %396 = vmatpush.msra.mxu1 %v250_v40 }
  0x45   :  { %346 = vmatpush.msrb.mxu2 %v145_v15  ;;  %366 = vmatpush.msrb.mxu3 %v209_v16 }
  0x46   :  { %377 = vmatpush.msra.mxu0 %v182_v43  ;;  %397 = vmatpush.msra.mxu1 %v246_v44 }
  0x47   :  { %347 = vmatpush.msrb.mxu2 %v141_v21  ;;  %367 = vmatpush.msrb.mxu3 %v205_v22 }
  0x48   :  { %378 = vmatpush.msra.mxu0 %v178_v47  ;;  %398 = vmatpush.msra.mxu1 %v242_v48 }
  0x49   :  { %348 = vmatpush.msrb.mxu2 %v137_v27  ;;  %368 = vmatpush.msrb.mxu3 %v201_v28 }
  0x4a   :  { %379 = vmatpush.msra.mxu0 %v174_v51  ;;  %399 = vmatpush.msra.mxu1 %v238_v52 }
  0x4b   :  { %349 = vmatpush.msrb.mxu2 %v133_v31  ;;  %369 = vmatpush.msrb.mxu3 %v197_v32 }
  0x4c   :  { %380 = vmatpush.msra.mxu0 %v170_v55  ;;  %400 = vmatpush.msra.mxu1 %v234_v56 }
  0x4d   :  { %350 = vmatpush.msrb.mxu2 %v129_v35  ;;  %370 = vmatpush.msrb.mxu3 %v193_v36 }
  0x4e   :  { %381 = vmatpush.msra.mxu0 %v166_v59  ;;  %401 = vmatpush.msra.mxu1 %v230_v60 }
  0x50   :  { %382 = vmatpush.msra.mxu0 %v162_v63  ;;  %402 = vmatpush.msra.mxu1 %v226_v0 }
  0x52   :  { %383 = vmatpush.msra.mxu0 %v158_v3  ;;  %403 = vmatpush.msra.mxu1 %v222_v4 }
  0x54   :  { %384 = vmatpush.msra.mxu0 %v154_v7  ;;  %404 = vmatpush.msra.mxu1 %v218_v8 }
  0x56   :  { %385 = vmatpush.msra.mxu0 %v150_v11  ;;  %405 = vmatpush.msra.mxu1 %v214_v12 }
  0x58   :  { %386 = vmatpush.msra.mxu0 %v146_v17  ;;  %406 = vmatpush.msra.mxu1 %v210_v20 }
  0x5a   :  { %387 = vmatpush.msra.mxu0 %v142_v23  ;;  %407 = vmatpush.msra.mxu1 %v206_v26 }
  0x5c   :  { %388 = vmatpush.msra.mxu0 %v138_v29  ;;  %408 = vmatpush.msra.mxu1 %v202_v30 }
  0x5e   :  { %389 = vmatpush.msra.mxu0 %v134_v33  ;;  %409 = vmatpush.msra.mxu1 %v198_v34 }
  0x60   :  { %390 = vmatpush.msra.mxu0 %v130_v37  ;;  %410 = vmatpush.msra.mxu1 %v194_v38 }
  0x9e   :  { %v874_v13 = vpop.f32.mrf.mxu0  ;;  %v876_v14 = vpop.f32.mrf.mxu1 }
  0x9f   :  { %v87_v18 = vsub.f32 0.0, %v874_v13  ;;  %v88_v19 = vsub.f32 0.0, %v876_v14 }
  0xa1   :  { %v89_v24 = vmul.f32 1.442695, %v87_v18  ;;  %v91_v25 = vmul.f32 1.442695, %v88_v19 }
  0xa3   :  { %423 = vpow2.f32 %v89_v24 }
  0xa4   :  { %425 = vpow2.f32 %v91_v25 }
  0xa9   :  { %v424_v39 = vpop.eup %423 }
  0xaa   :  { %v426_v40 = vpop.eup %425  ;;  %v93_v41 = vadd.f32 1.0, %v424_v39 }
  0xab   :  { %v94_v42 = vadd.f32 1.0, %v426_v40 }
  0xac   :  { %427 = vrcp.f32 %v93_v41  ;;  %v106_v48 = vand.u32 2147483648, %v93_v41  ;;  %v104_v51 = vand.u32 2147483647, %v93_v41  ;;  %vm100_vm2 = vweird.f32 %v93_v41 }
  0xad   :  { %429 = vrcp.f32 %v94_v42  ;;  %v121_v52 = vand.u32 2147483648, %v94_v42  ;;  %v119_v54 = vand.u32 2147483647, %v94_v42  ;;  %vm115_vm4 = vweird.f32 %v94_v42 }
  0xae   :  { %v107_v56 = vor.u32 1.1754944e-38, %v106_v48  ;;  %vm105_vm5 = vcmp.eq.f32.partialorder %v104_v51, 8.507059e+37 }
  0xaf   :  { %v122_v59 = vor.u32 1.1754944e-38, %v121_v52  ;;  %vm120_vm7 = vcmp.eq.f32.partialorder %v119_v54, 8.507059e+37 }
  0xb2   :  { %v428_v43 = vpop.eup %427 }
  0xb3   :  { %v430_v44 = vpop.eup %429  ;;  %v96_v45 = vmul.f32 %v428_v43, %v93_v41  ;;  %vm101_vm0 = vweird.f32 %v428_v43 }
  0xb4   :  { %v111_v46 = vmul.f32 %v430_v44, %v94_v42  ;;  %vm116_vm1 = vweird.f32 %v430_v44  ;;  %vm102_vm3 = vmor %vm100_vm2, %vm101_vm0 }
  0xb5   :  { %v97_v47 = vsub.f32 1.0, %v96_v45  ;;  %vm117_vm6 = vmor %vm115_vm4, %vm116_vm1 }
  0xb6   :  { %v112_v49 = vsub.f32 1.0, %v111_v46 }
  0xb7   :  { %v98_v50 = vmul.f32 %v428_v43, %v97_v47 }
  0xb8   :  { %v113_v53 = vmul.f32 %v430_v44, %v112_v49 }
  0xb9   :  { %v99_v55 = vadd.f32 %v428_v43, %v98_v50 }
  0xba   :  { %v114_v57 = vadd.f32 %v430_v44, %v113_v53 }
  0xbb   :  { %v103_v58 = vsel %vm102_vm3, %v428_v43, %v99_v55 }
  0xbc   :  { %v108_v60 = vsel %vm105_vm5, %v107_v56, %v103_v58  ;;  %v118_v61 = vsel %vm117_vm6, %v430_v44, %v114_v57 }
  0xbd   :  { %v125_v62 = vmul.f32 %v108_v60, %v874_v13  ;;  %v123_v63 = vsel %vm120_vm7, %v122_v59, %v118_v61 }
  0xbe   :  { %v126_v0 = vmul.f32 %v123_v63, %v876_v14 }
  0xbf   :  { %271 = vmatmul.f32.vlgmr.msra.gmra.mxu2 %v125_v62  ;;  %311 = vmatmul.f32.vlgmr.msrb.gmra.mxu0 %v125_v62 }
  0xc0   :  { %291 = vmatmul.f32.vlgmr.msra.gmra.mxu3 %v126_v0  ;;  %331 = vmatmul.f32.vlgmr.msrb.gmra.mxu1 %v126_v0 }
  0xc7   :  { %351 = vmatmul.f32.vlgmr.msrb.gmra.mxu2 %v125_v62  ;;  %391 = vmatmul.f32.vlgmr.msra.gmra.mxu0 %v125_v62 }
  0xc8   :  { %371 = vmatmul.f32.vlgmr.msrb.gmra.mxu3 %v126_v0  ;;  %411 = vmatmul.f32.vlgmr.msra.gmra.mxu1 %v126_v0 }
 0x13c   :  { %v312_v1 = vpop.f32.mrf.mxu0 }
 0x13d   :  { %v332_v2 = vpop.f32.mrf.mxu1 }
 0x13e   :  { %v333_v3 = vadd.f32 %v332_v2, %v312_v1 }
 0x140   :  { %416 = vst [vmem:[%s957_s3 + $0x8] sm:$0xff] %v333_v3 }
 0x142   :  { %v272_v4 = vpop.f32.mrf.mxu2 }
 0x143   :  { %v292_v5 = vpop.f32.mrf.mxu3 }
 0x144   :  { %v293_v6 = vadd.f32 %v292_v5, %v272_v4  ;;  %v392_v7 = vpop.f32.mrf.mxu0 }
 0x145   :  { %v412_v8 = vpop.f32.mrf.mxu1 }
 0x146   :  { %415 = vst [vmem:[%s957_s3] sm:$0xff] %v293_v6  ;;  %v413_v9 = vadd.f32 %v412_v8, %v392_v7 }
 0x148   :  { %418 = vst [vmem:[%s957_s3 + $0x18] sm:$0xff] %v413_v9 }
 0x14a   :  { %v352_v10 = vpop.f32.mrf.mxu2 }
 0x14b   :  { %v372_v11 = vpop.f32.mrf.mxu3 }
 0x14c   :  { %v373_v12 = vadd.f32 %v372_v11, %v352_v10 }
 0x14e   :  { %417 = vst [vmem:[%s957_s3 + $0x10] sm:$0xff] %v373_v12 }

// kernel: jvp__.6
= control target key start
LH: loop header
LB: loop body
LE: loop exit
PB: predicated region body
PF: predicated region fallthrough
CT: control target
= control target key end

     0   :  { %s267_s3 = inlined_call_operand.vmem [shape: f32[128,128], index: 3, kind: input, shape index: {}]   ;;  %s268_s2 = inlined_call_operand.vmem [shape: f32[128,128], index: 2, kind: input, shape index: {}]   ;;  %s269_s1 = inlined_call_operand.vmem [shape: f32[8,128], index: 1, kind: input, shape index: {}]   ;;  %s270_s0 = inlined_call_operand.vmem [shape: f32[8,128], index: 0, kind: input, shape index: {}]   ;;  %s271_s5 = inlined_call_operand.vmem [shape: f32[8,128], index: 5, kind: output, shape index: {1}]   ;;  %s272_s4 = inlined_call_operand.vmem [shape: f32[8,128], index: 4, kind: output, shape index: {0}]  }
   0x1   :  { %v52_v0 = vld [vmem:[%s267_s3 + $0x78] sm:$0xff]  ;;  %v51_v2 = vld [vmem:[%s267_s3 + $0x70] sm:$0xff]  ;;  %v50_v4 = vld [vmem:[%s267_s3 + $0x68] sm:$0xff] }
   0x2   :  { %v35_v1 = vld [vmem:[%s268_s2 + $0x78] sm:$0xff]  ;;  %53 = vmatpush.msra.mxu0 %v52_v0  ;;  %v34_v3 = vld [vmem:[%s268_s2 + $0x70] sm:$0xff]  ;;  %v33_v5 = vld [vmem:[%s268_s2 + $0x68] sm:$0xff] }
   0x3   :  { %73 = vmatpush.msra.mxu1 %v35_v1  ;;  %v49_v6 = vld [vmem:[%s267_s3 + $0x60] sm:$0xff]  ;;  %v48_v8 = vld [vmem:[%s267_s3 + $0x58] sm:$0xff]  ;;  %v47_v10 = vld [vmem:[%s267_s3 + $0x50] sm:$0xff] }
   0x4   :  { %54 = vmatpush.msra.mxu0 %v51_v2  ;;  %v32_v7 = vld [vmem:[%s268_s2 + $0x60] sm:$0xff]  ;;  %v31_v9 = vld [vmem:[%s268_s2 + $0x58] sm:$0xff]  ;;  %v30_v11 = vld [vmem:[%s268_s2 + $0x50] sm:$0xff] }
   0x5   :  { %74 = vmatpush.msra.mxu1 %v34_v3  ;;  %v46_v12 = vld [vmem:[%s267_s3 + $0x48] sm:$0xff]  ;;  %v45_v14 = vld [vmem:[%s267_s3 + $0x40] sm:$0xff]  ;;  %v44_v16 = vld [vmem:[%s267_s3 + $0x38] sm:$0xff] }
   0x6   :  { %55 = vmatpush.msra.mxu0 %v50_v4  ;;  %v29_v13 = vld [vmem:[%s268_s2 + $0x48] sm:$0xff]  ;;  %v28_v15 = vld [vmem:[%s268_s2 + $0x40] sm:$0xff]  ;;  %v27_v17 = vld [vmem:[%s268_s2 + $0x38] sm:$0xff] }
   0x7   :  { %75 = vmatpush.msra.mxu1 %v33_v5  ;;  %v43_v18 = vld [vmem:[%s267_s3 + $0x30] sm:$0xff]  ;;  %v42_v20 = vld [vmem:[%s267_s3 + $0x28] sm:$0xff]  ;;  %v41_v22 = vld [vmem:[%s267_s3 + $0x20] sm:$0xff] }
   0x8   :  { %56 = vmatpush.msra.mxu0 %v49_v6  ;;  %v26_v19 = vld [vmem:[%s268_s2 + $0x30] sm:$0xff]  ;;  %v25_v21 = vld [vmem:[%s268_s2 + $0x28] sm:$0xff]  ;;  %v24_v23 = vld [vmem:[%s268_s2 + $0x20] sm:$0xff] }
   0x9   :  { %76 = vmatpush.msra.mxu1 %v32_v7  ;;  %v40_v24 = vld [vmem:[%s267_s3 + $0x18] sm:$0xff]  ;;  %v39_v26 = vld [vmem:[%s267_s3 + $0x10] sm:$0xff]  ;;  %v38_v28 = vld [vmem:[%s267_s3 + $0x8] sm:$0xff] }
   0xa   :  { %57 = vmatpush.msra.mxu0 %v48_v8  ;;  %v23_v25 = vld [vmem:[%s268_s2 + $0x18] sm:$0xff]  ;;  %v22_v27 = vld [vmem:[%s268_s2 + $0x10] sm:$0xff]  ;;  %v21_v29 = vld [vmem:[%s268_s2 + $0x8] sm:$0xff] }
   0xb   :  { %77 = vmatpush.msra.mxu1 %v31_v9  ;;  %v37_v30 = vld [vmem:[%s267_s3] sm:$0xff] }
   0xc   :  { %58 = vmatpush.msra.mxu0 %v47_v10  ;;  %v20_v31 = vld [vmem:[%s268_s2] sm:$0xff] }
   0xd   :  { %78 = vmatpush.msra.mxu1 %v30_v11  ;;  %v36_v32 = vld [vmem:[%s269_s1] sm:$0xff] }
   0xe   :  { %59 = vmatpush.msra.mxu0 %v46_v12  ;;  %v19_v33 = vld [vmem:[%s270_s0] sm:$0xff] }
   0xf   :  { %79 = vmatpush.msra.mxu1 %v29_v13 }
  0x10   :  { %60 = vmatpush.msra.mxu0 %v45_v14 }
  0x11   :  { %80 = vmatpush.msra.mxu1 %v28_v15 }
  0x12   :  { %61 = vmatpush.msra.mxu0 %v44_v16 }
  0x13   :  { %81 = vmatpush.msra.mxu1 %v27_v17 }
  0x14   :  { %62 = vmatpush.msra.mxu0 %v43_v18 }
  0x15   :  { %82 = vmatpush.msra.mxu1 %v26_v19 }
  0x16   :  { %63 = vmatpush.msra.mxu0 %v42_v20 }
  0x17   :  { %83 = vmatpush.msra.mxu1 %v25_v21 }
  0x18   :  { %64 = vmatpush.msra.mxu0 %v41_v22 }
  0x19   :  { %84 = vmatpush.msra.mxu1 %v24_v23 }
  0x1a   :  { %65 = vmatpush.msra.mxu0 %v40_v24 }
  0x1b   :  { %85 = vmatpush.msra.mxu1 %v23_v25 }
  0x1c   :  { %66 = vmatpush.msra.mxu0 %v39_v26 }
  0x1d   :  { %86 = vmatpush.msra.mxu1 %v22_v27 }
  0x1e   :  { %67 = vmatpush.msra.mxu0 %v38_v28 }
  0x1f   :  { %87 = vmatpush.msra.mxu1 %v21_v29 }
  0x20   :  { %68 = vmatpush.msra.mxu0 %v37_v30 }
  0x21   :  { %88 = vmatpush.msra.mxu1 %v20_v31  ;;  %69 = vmatmul.f32.vlgmr.msra.gmra.mxu0 %v36_v32 }
  0x22   :  { %89 = vmatmul.f32.vlgmr.msra.gmra.mxu1 %v19_v33 }
  0x9e   :  { %v70_v34 = vpop.f32.mrf.mxu0 }
  0x9f   :  { %v90_v35 = vpop.f32.mrf.mxu1 }
  0xa0   :  { %v91_v36 = vadd.f32 %v90_v35, %v70_v34 }
  0xa2   :  { %93 = vst [vmem:[%s271_s5] sm:$0xff] %v91_v36  ;;  %v95_v37 = vsub.f32 0.0, %v91_v36 }
  0xa4   :  { %v96_v38 = vmul.f32 1.442695, %v95_v37 }
  0xa6   :  { %125 = vpow2.f32 %v96_v38 }
  0xac   :  { %v126_v39 = vpop.eup %125 }
  0xad   :  { %v98_v40 = vadd.f32 1.0, %v126_v39 }
  0xaf   :  { %127 = vrcp.f32 %v98_v40  ;;  %v110_v44 = vand.u32 2147483648, %v98_v40  ;;  %v108_v46 = vand.u32 2147483647, %v98_v40  ;;  %vm104_vm1 = vweird.f32 %v98_v40 }
  0xb1   :  { %v111_v48 = vor.u32 1.1754944e-38, %v110_v44  ;;  %vm109_vm3 = vcmp.eq.f32.partialorder %v108_v46, 8.507059e+37 }
  0xb5   :  { %v128_v41 = vpop.eup %127 }
  0xb6   :  { %v100_v42 = vmul.f32 %v128_v41, %v98_v40  ;;  %vm105_vm0 = vweird.f32 %v128_v41 }
  0xb7   :  { %vm106_vm2 = vmor %vm104_vm1, %vm105_vm0 }
  0xb8   :  { %v101_v43 = vsub.f32 1.0, %v100_v42 }
  0xba   :  { %v102_v45 = vmul.f32 %v128_v41, %v101_v43 }
  0xbc   :  { %v103_v47 = vadd.f32 %v128_v41, %v102_v45 }
  0xbe   :  { %v107_v49 = vsel %vm106_vm2, %v128_v41, %v103_v47 }
  0xbf   :  { %v112_v50 = vsel %vm109_vm3, %v111_v48, %v107_v49 }
  0xc0   :  { %v114_v51 = vmul.f32 %v112_v50, %v91_v36 }
  0xc2   :  { %v115_v52 = vadd.f32 %v114_v51, %v36_v32 }
  0xc4   :  { %116 = vst [vmem:[%s272_s4] sm:$0xff] %v115_v52 }

// kernel: jvp__.9
= control target key start
LH: loop header
LB: loop body
LE: loop exit
PB: predicated region body
PF: predicated region fallthrough
CT: control target
= control target key end

     0   :  { %vm48_vm0 = vcmask 261120   ;;  %s123_s1 = inlined_call_operand.vmem [shape: f32[128,32], index: 1, kind: input, shape index: {}]   ;;  %s124_s0 = inlined_call_operand.vmem [shape: f32[8,128], index: 0, kind: input, shape index: {}]   ;;  %s125_s2 = inlined_call_operand.vmem [shape: f32[8,32], index: 2, kind: output, shape index: {}]  }
   0x1   :  { %v27_v0 = vld [vmem:[%s123_s1 + $0x78] sm:$0xff]  ;;  %v26_v1 = vld [vmem:[%s123_s1 + $0x70] sm:$0xff]  ;;  %v25_v2 = vld [vmem:[%s123_s1 + $0x68] sm:$0xff] }
   0x2   :  { %28 = vmatpush.msra.mxu0 %v27_v0  ;;  %v24_v3 = vld [vmem:[%s123_s1 + $0x60] sm:$0xff]  ;;  %v23_v4 = vld [vmem:[%s123_s1 + $0x58] sm:$0xff]  ;;  %v22_v5 = vld [vmem:[%s123_s1 + $0x50] sm:$0xff] }
   0x3   :  { %v21_v6 = vld [vmem:[%s123_s1 + $0x48] sm:$0xff]  ;;  %v20_v7 = vld [vmem:[%s123_s1 + $0x40] sm:$0xff]  ;;  %v19_v8 = vld [vmem:[%s123_s1 + $0x38] sm:$0xff] }
   0x4   :  { %29 = vmatpush.msra.mxu0 %v26_v1  ;;  %v18_v9 = vld [vmem:[%s123_s1 + $0x30] sm:$0xff]  ;;  %v17_v10 = vld [vmem:[%s123_s1 + $0x28] sm:$0xff]  ;;  %v16_v11 = vld [vmem:[%s123_s1 + $0x20] sm:$0xff] }
   0x5   :  { %v15_v12 = vld [vmem:[%s123_s1 + $0x18] sm:$0xff]  ;;  %v14_v13 = vld [vmem:[%s123_s1 + $0x10] sm:$0xff]  ;;  %v13_v14 = vld [vmem:[%s123_s1 + $0x8] sm:$0xff] }
   0x6   :  { %30 = vmatpush.msra.mxu0 %v25_v2  ;;  %v12_v15 = vld [vmem:[%s123_s1] sm:$0xff] }
   0x7   :  { %v11_v16 = vld [vmem:[%s124_s0] sm:$0xff] }
   0x8   :  { %31 = vmatpush.msra.mxu0 %v24_v3 }
   0xa   :  { %32 = vmatpush.msra.mxu0 %v23_v4 }
   0xc   :  { %33 = vmatpush.msra.mxu0 %v22_v5 }
   0xe   :  { %34 = vmatpush.msra.mxu0 %v21_v6 }
  0x10   :  { %35 = vmatpush.msra.mxu0 %v20_v7 }
  0x12   :  { %36 = vmatpush.msra.mxu0 %v19_v8 }
  0x14   :  { %37 = vmatpush.msra.mxu0 %v18_v9 }
  0x16   :  { %38 = vmatpush.msra.mxu0 %v17_v10 }
  0x18   :  { %39 = vmatpush.msra.mxu0 %v16_v11 }
  0x1a   :  { %40 = vmatpush.msra.mxu0 %v15_v12 }
  0x1c   :  { %41 = vmatpush.msra.mxu0 %v14_v13 }
  0x1e   :  { %42 = vmatpush.msra.mxu0 %v13_v14 }
  0x20   :  { %43 = vmatpush.msra.mxu0 %v12_v15 }
  0x21   :  { %44 = vmatmul.f32.vlgmr.msra.gmra.mxu0 %v11_v16 }
  0x9e   :  { %v45_v17 = vpop.f32.mrf.mxu0 }
  0x9f   :  { %49 = vst.msk [vmem:[%s125_s2] sm:$0xff] %vm48_vm0, %v45_v17 }

</bundles_post_ra>
